<compile_context>
chip_gen: v5e
topology: v5e:2x2
jax: 0.10.0
libtpu: 0.0.40
codegen_flags: <defaults>
</compile_context>

<pallas_src>
import functools

import numpy as np
import jax
import jax.numpy as jnp
from jax import lax
from jax.experimental import pallas as pl
from jax.experimental.pallas import tpu as pltpu


def _round_up(x, m):
    return ((x + m - 1) // m) * m


def _cdiv(a, b):
    return (a + b - 1) // b


def _ffm_kernel(num_fields, vocab_pad, embed_dim, mxu_dtype,
                idx_ref, tab_ref, out_ref):
    """One batch tile per grid step.

    idx_ref: VMEM (B_t, F)            int32, offset-adjusted indices
    tab_ref: VMEM (vocab_pad, F*D)    mxu_dtype, lane-dense stacked tables:
                                      tab_ref[v, f*D:(f+1)*D] == tables[f, v, :]
    out_ref: VMEM (B_t, P*D)          float32, lane-dense flattened pair products
    """
    D = embed_dim
    idx = idx_ref[...]                                        # (B_t, F) int32
    bt = idx.shape[0]
    tab = tab_ref[...]                                        # (vocab_pad, F*D)

    iota_v = lax.broadcasted_iota(jnp.int32, (bt, vocab_pad), 1)

    # Fused gather: one MXU matmul per field *column* g.
    #   G[g][:, f*D:(f+1)*D] == tables[f][idx[:, g]] == xs[f][:, g]
    # Each one-hot is built and consumed immediately (never all F live).
    gathered = []
    for g in range(num_fields):
        onehot = (iota_v == idx[:, g:g + 1]).astype(mxu_dtype)     # (B_t, V)
        gathered.append(
            jnp.dot(onehot, tab, preferred_element_type=jnp.float32))

    # Pairwise field-aware products:
    #   pair (i, j): xs[j][:, i] * xs[i][:, j]
    #              = G[i][:, j*D:(j+1)*D] * G[j][:, i*D:(i+1)*D]
    # Stored as 128-lane-aligned groups so only a few products are live at a
    # time and most stores are full-width.
    pairs = [(i, j) for i in range(num_fields - 1)
             for j in range(i + 1, num_fields)]
    per_store = max(1, 128 // D)
    for k in range(0, len(pairs), per_store):
        chunk = pairs[k:k + per_store]
        prods = [gathered[i][:, j * D:(j + 1) * D] *
                 gathered[j][:, i * D:(i + 1) * D] for (i, j) in chunk]
        blk = prods[0] if len(prods) == 1 else jnp.concatenate(prods, axis=-1)
        out_ref[:, pl.ds(k * D, len(chunk) * D)] = blk.astype(out_ref.dtype)


def ffm_forward(x_idx, tables, field_dims, *, block_b=512,
                mxu_dtype=jnp.bfloat16):
    """x_idx:  (batch, num_fields) int, raw (un-offset) indices per field
       tables: (num_fields, vocab, embed_dim) float32 stacked embedding weights
       mxu_dtype: operand dtype of the gather matmul (bf16 = native MXU rate on
                  v6e/v7x; float32 gives a bit-exact gather of the f32 table)
       returns (batch, num_pairs, embed_dim) float32"""
    field_dims = tuple(int(d) for d in field_dims)
    num_fields = len(field_dims)
    vocab = sum(field_dims)
    batch = x_idx.shape[0]
    embed_dim = tables.shape[-1]
    num_pairs = num_fields * (num_fields - 1) // 2

    offsets = jnp.asarray(
        np.concatenate(([0], np.cumsum(field_dims)[:-1])), dtype=jnp.int32)
    idx = x_idx.astype(jnp.int32) + offsets[None, :]               # (B, F)

    # Lane-dense RHS for the fused gather: (vocab_pad, F*D), fields along lanes.
    # vocab is zero-padded to a sublane-friendly multiple; padded rows are never
    # selected because all indices are < vocab.
    vocab_pad = _round_up(vocab, 16)
    tab_flat = jnp.transpose(tables, (1, 0, 2)).reshape(
        vocab, num_fields * embed_dim)
    tab_flat = jnp.pad(tab_flat, ((0, vocab_pad - vocab), (0, 0)))
    tab_flat = tab_flat.astype(mxu_dtype)

    # Batch tile: multiple of 8 sublanes, as large as possible, but keep >= 2
    # grid steps when the batch allows so ("parallel",) can use both v7x TCs.
    padded8 = _round_up(batch, 8)
    half = _round_up(_cdiv(padded8, 2), 8)
    b_t = max(8, min(block_b, half))
    padded = _round_up(batch, b_t)
    if padded != batch:
        # Padded rows use (offset-adjusted) index 0 for every field; they are
        # sliced off below and must never feed an in-kernel batch reduction.
        idx = jnp.pad(idx, ((0, padded - batch), (0, 0)))

    grid = (padded // b_t,)

    out_flat = pl.pallas_call(
        functools.partial(_ffm_kernel, num_fields, vocab_pad, embed_dim,
                          mxu_dtype),
        out_shape=jax.ShapeDtypeStruct((padded, num_pairs * embed_dim),
                                       jnp.float32),
        grid=grid,
        in_specs=[
            # per-tile index block (batch rows on sublanes)
            pl.BlockSpec((b_t, num_fields), lambda b: (b, 0)),
            # full lane-dense table, identical for every grid step
            pl.BlockSpec((vocab_pad, num_fields * embed_dim),
                         lambda b: (0, 0)),
        ],
        out_specs=pl.BlockSpec((b_t, num_pairs * embed_dim), lambda b: (b, 0)),
        compiler_params=pltpu.CompilerParams(
            # batch tiles are fully independent -> shard across TCs on v7x,
            # harmless on single-TC v5e/v6e.
            dimension_semantics=("parallel",),
            # explicit scoped-VMEM limit (usage here is only a few MiB).
            vmem_limit_bytes=32 * 1024 * 1024),
    )(idx, tab_flat)

    return out_flat[:batch].reshape(batch, num_pairs, embed_dim)


def ffm_reference(x_idx, tables, field_dims):
    """Pure-JAX reference mirroring the PyTorch forward."""
    field_dims = tuple(int(d) for d in field_dims)
    num_fields = len(field_dims)
    offsets = jnp.asarray(
        np.concatenate(([0], np.cumsum(field_dims)[:-1])), dtype=jnp.int32)
    idx = x_idx.astype(jnp.int32) + offsets[None, :]
    xs = [tables[f][idx] for f in range(num_fields)]   # each (B, F, D)
    outs = []
    for i in range(num_fields - 1):
        for j in range(i + 1, num_fields):
            outs.append(xs[j][:, i] * xs[i][:, j])
    return jnp.stack(outs, axis=1)                      # (B, P, D)


if __name__ == "__main__":
    field_dims = (3, 4, 5, 6)     # num_fields = 4, vocab = 18
    embed_dim = 32                # F*D = 128 -> one full-lane gather RHS
    batch = 256                   # -> 2 independent batch tiles of 128 rows
    num_fields = len(field_dims)
    vocab = sum(field_dims)
    num_pairs = num_fields * (num_fields - 1) // 2

    key = jax.random.PRNGKey(0)
    k_tab, k_idx = jax.random.split(key)

    # Xavier-uniform init of each Embedding(vocab, embed_dim), deterministic.
    bound = float(np.sqrt(6.0 / (vocab + embed_dim)))
    tables = jax.random.uniform(
        k_tab, (num_fields, vocab, embed_dim),
        minval=-bound, maxval=bound, dtype=jnp.float32)

    # Raw per-field indices, each within its field's cardinality.
    cols = []
    ks = jax.random.split(k_idx, num_fields)
    for f, d in enumerate(field_dims):
        cols.append(jax.random.randint(ks[f], (batch,), 0, d, dtype=jnp.int32))
    x_idx = jnp.stack(cols, axis=1)                     # (batch, num_fields)

    # Default bf16 MXU path: the one-hot gather is exact, so compare against a
    # reference built from the bf16-quantized table (tolerance only absorbs
    # f32 product rounding).
    out = jax.block_until_ready(ffm_forward(x_idx, tables, field_dims))
    assert out.shape == (batch, num_pairs, embed_dim)
    ref_q = ffm_reference(
        x_idx, tables.astype(jnp.bfloat16).astype(jnp.float32), field_dims)
    assert jnp.allclose(out, ref_q, atol=1e-3, rtol=1e-3), "bf16-path mismatch"

    # f32 MXU path: bit-exact gather, matches the f32 reference tightly.
    out_f32 = jax.block_until_ready(
        ffm_forward(x_idx, tables, field_dims, mxu_dtype=jnp.float32))
    ref = ffm_reference(x_idx, tables, field_dims)
    assert jnp.allclose(out_f32, ref, atol=1e-5, rtol=1e-5), "f32-path mismatch"

    print("KERNEL_OK")
</pallas_src>

<mosaic_0001>
module attributes {stable_mosaic.version = 11 : i64} {
  func.func @_ffm_kernel(%arg0: i32, %arg1: memref<128x4xi32, #tpu.memory_space<vmem>>, %arg2: memref<32x128xbf16, #tpu.memory_space<vmem>>, %arg3: memref<128x192xf32, #tpu.memory_space<vmem>>) attributes {dimension_semantics = [#tpu.dimension_semantics<parallel>], iteration_bounds = array<i64: 2>, scalar_prefetch = 0 : i64, scratch_operands = 0 : i64, tpu.core_type = #tpu.core_type<tc>, window_params = [{transform_indices = @transform_0, window_bounds = array<i64: 128, 4>}, {pipeline_mode = #tpu.pipeline_mode<synchronous>, transform_indices = @transform_1, window_bounds = array<i64: 32, 128>}, {transform_indices = @transform_2, window_bounds = array<i64: 128, 192>}]} {
    %c0 = arith.constant 0 : index
    %c0_0 = arith.constant 0 : index
    %0 = vector.load %arg1[%c0, %c0_0] : memref<128x4xi32, #tpu.memory_space<vmem>>, vector<128x4xi32>
    %c0_1 = arith.constant 0 : index
    %c0_2 = arith.constant 0 : index
    %1 = vector.load %arg2[%c0_1, %c0_2] : memref<32x128xbf16, #tpu.memory_space<vmem>>, vector<32x128xbf16>
    %2 = tpu.iota {dimensions = array<i32: 1>} : vector<128x32xi32>
    %3 = vector.extract_strided_slice %0 {offsets = [0, 0], sizes = [128, 1], strides = [1, 1]} : vector<128x4xi32> to vector<128x1xi32>
    %4 = vector.broadcast %3 : vector<128x1xi32> to vector<128x32xi32>
    %5 = arith.cmpi eq, %2, %4 : vector<128x32xi32>
    %6 = arith.extui %5 : vector<128x32xi1> to vector<128x32xi32>
    %7 = arith.sitofp %6 : vector<128x32xi32> to vector<128x32xf32>
    %8 = arith.truncf %7 : vector<128x32xf32> to vector<128x32xbf16>
    %cst = arith.constant dense<0.000000e+00> : vector<128x128xf32>
    %9 = tpu.matmul %8, %1, %cst {dimension_numbers = #tpu.dot_dimension_numbers<[1], [0], [0], [1], [0, 0, 1, 1], [], []>} : vector<128x32xbf16>, vector<32x128xbf16>, vector<128x128xf32> -> vector<128x128xf32>
    %10 = vector.extract_strided_slice %0 {offsets = [0, 1], sizes = [128, 1], strides = [1, 1]} : vector<128x4xi32> to vector<128x1xi32>
    %11 = vector.broadcast %10 : vector<128x1xi32> to vector<128x32xi32>
    %12 = arith.cmpi eq, %2, %11 : vector<128x32xi32>
    %13 = arith.extui %12 : vector<128x32xi1> to vector<128x32xi32>
    %14 = arith.sitofp %13 : vector<128x32xi32> to vector<128x32xf32>
    %15 = arith.truncf %14 : vector<128x32xf32> to vector<128x32xbf16>
    %cst_3 = arith.constant dense<0.000000e+00> : vector<128x128xf32>
    %16 = tpu.matmul %15, %1, %cst_3 {dimension_numbers = #tpu.dot_dimension_numbers<[1], [0], [0], [1], [0, 0, 1, 1], [], []>} : vector<128x32xbf16>, vector<32x128xbf16>, vector<128x128xf32> -> vector<128x128xf32>
    %17 = vector.extract_strided_slice %0 {offsets = [0, 2], sizes = [128, 1], strides = [1, 1]} : vector<128x4xi32> to vector<128x1xi32>
    %18 = vector.broadcast %17 : vector<128x1xi32> to vector<128x32xi32>
    %19 = arith.cmpi eq, %2, %18 : vector<128x32xi32>
    %20 = arith.extui %19 : vector<128x32xi1> to vector<128x32xi32>
    %21 = arith.sitofp %20 : vector<128x32xi32> to vector<128x32xf32>
    %22 = arith.truncf %21 : vector<128x32xf32> to vector<128x32xbf16>
    %cst_4 = arith.constant dense<0.000000e+00> : vector<128x128xf32>
    %23 = tpu.matmul %22, %1, %cst_4 {dimension_numbers = #tpu.dot_dimension_numbers<[1], [0], [0], [1], [0, 0, 1, 1], [], []>} : vector<128x32xbf16>, vector<32x128xbf16>, vector<128x128xf32> -> vector<128x128xf32>
    %24 = vector.extract_strided_slice %0 {offsets = [0, 3], sizes = [128, 1], strides = [1, 1]} : vector<128x4xi32> to vector<128x1xi32>
    %25 = vector.broadcast %24 : vector<128x1xi32> to vector<128x32xi32>
    %26 = arith.cmpi eq, %2, %25 : vector<128x32xi32>
    %27 = arith.extui %26 : vector<128x32xi1> to vector<128x32xi32>
    %28 = arith.sitofp %27 : vector<128x32xi32> to vector<128x32xf32>
    %29 = arith.truncf %28 : vector<128x32xf32> to vector<128x32xbf16>
    %cst_5 = arith.constant dense<0.000000e+00> : vector<128x128xf32>
    %30 = tpu.matmul %29, %1, %cst_5 {dimension_numbers = #tpu.dot_dimension_numbers<[1], [0], [0], [1], [0, 0, 1, 1], [], []>} : vector<128x32xbf16>, vector<32x128xbf16>, vector<128x128xf32> -> vector<128x128xf32>
    %31 = vector.extract_strided_slice %9 {offsets = [0, 32], sizes = [128, 32], strides = [1, 1]} : vector<128x128xf32> to vector<128x32xf32>
    %32 = vector.extract_strided_slice %16 {offsets = [0, 0], sizes = [128, 32], strides = [1, 1]} : vector<128x128xf32> to vector<128x32xf32>
    %33 = arith.mulf %31, %32 : vector<128x32xf32>
    %34 = vector.extract_strided_slice %9 {offsets = [0, 64], sizes = [128, 32], strides = [1, 1]} : vector<128x128xf32> to vector<128x32xf32>
    %35 = vector.extract_strided_slice %23 {offsets = [0, 0], sizes = [128, 32], strides = [1, 1]} : vector<128x128xf32> to vector<128x32xf32>
    %36 = arith.mulf %34, %35 : vector<128x32xf32>
    %37 = vector.extract_strided_slice %9 {offsets = [0, 96], sizes = [128, 32], strides = [1, 1]} : vector<128x128xf32> to vector<128x32xf32>
    %38 = vector.extract_strided_slice %30 {offsets = [0, 0], sizes = [128, 32], strides = [1, 1]} : vector<128x128xf32> to vector<128x32xf32>
    %39 = arith.mulf %37, %38 : vector<128x32xf32>
    %40 = vector.extract_strided_slice %16 {offsets = [0, 64], sizes = [128, 32], strides = [1, 1]} : vector<128x128xf32> to vector<128x32xf32>
    %41 = vector.extract_strided_slice %23 {offsets = [0, 32], sizes = [128, 32], strides = [1, 1]} : vector<128x128xf32> to vector<128x32xf32>
    %42 = arith.mulf %40, %41 : vector<128x32xf32>
    %43 = tpu.concatenate %33, %36, %39, %42 in 1 : vector<128x32xf32>, vector<128x32xf32>, vector<128x32xf32>, vector<128x32xf32> -> vector<128x128xf32>
    %c0_6 = arith.constant 0 : index
    %c0_7 = arith.constant 0 : index
    %44 = vector.load %arg3[%c0_6, %c0_7] : memref<128x192xf32, #tpu.memory_space<vmem>>, vector<128x128xf32>
    tpu.vector_store %arg3[%c0_6, %c0_7], %43 {strides = array<i32>} : memref<128x192xf32, #tpu.memory_space<vmem>>, vector<128x128xf32>,
    %45 = vector.extract_strided_slice %16 {offsets = [0, 96], sizes = [128, 32], strides = [1, 1]} : vector<128x128xf32> to vector<128x32xf32>
    %46 = vector.extract_strided_slice %30 {offsets = [0, 32], sizes = [128, 32], strides = [1, 1]} : vector<128x128xf32> to vector<128x32xf32>
    %47 = arith.mulf %45, %46 : vector<128x32xf32>
    %48 = vector.extract_strided_slice %23 {offsets = [0, 96], sizes = [128, 32], strides = [1, 1]} : vector<128x128xf32> to vector<128x32xf32>
    %49 = vector.extract_strided_slice %30 {offsets = [0, 64], sizes = [128, 32], strides = [1, 1]} : vector<128x128xf32> to vector<128x32xf32>
    %50 = arith.mulf %48, %49 : vector<128x32xf32>
    %51 = tpu.concatenate %47, %50 in 1 : vector<128x32xf32>, vector<128x32xf32> -> vector<128x64xf32>
    %c0_8 = arith.constant 0 : index
    %c128 = arith.constant 128 : index
    %52 = vector.load %arg3[%c0_8, %c128] : memref<128x192xf32, #tpu.memory_space<vmem>>, vector<128x64xf32>
    tpu.vector_store %arg3[%c0_8, %c128], %51 {strides = array<i32>} : memref<128x192xf32, #tpu.memory_space<vmem>>, vector<128x64xf32>,
    return
  }
  func.func @transform_0(%arg0: i32) -> (i32, i32) {
    %c0_i32 = arith.constant 0 : i32
    %c0_i32_0 = arith.constant 0 : i32
    return %arg0, %c0_i32 : i32, i32
  }
  func.func @transform_1(%arg0: i32) -> (i32, i32) {
    %c0_i32 = arith.constant 0 : i32
    %c0_i32_0 = arith.constant 0 : i32
    %c0_i32_1 = arith.constant 0 : i32
    return %c0_i32, %c0_i32_0 : i32, i32
  }
  func.func @transform_2(%arg0: i32) -> (i32, i32) {
    %c0_i32 = arith.constant 0 : i32
    %c0_i32_0 = arith.constant 0 : i32
    return %arg0, %c0_i32 : i32, i32
  }
}

</mosaic_0001>

<bundles_post_ra>
// kernel: tpu_custom_call.1
= control target key start
LH: loop header
LB: loop body
LE: loop exit
PB: predicated region body
PF: predicated region fallthrough
CT: control target
= control target key end

     0   :  { %s2043_s9 = smov 0   ;;  %s3093_s0 = inlined_call_operand.vmem [shape: s32[256,4], index: 0, kind: input, shape index: {}]   ;;  %s3094_s1 = inlined_call_operand.vmem [shape: bf16[32,128], index: 1, kind: input, shape index: {}]   ;;  %s3095_s2 = inlined_call_operand.vmem [shape: f32[256,192], index: 2, kind: output, shape index: {}]  }
   0x1 LB: > { %s1865_s10 = sadd.s32 4294967295, %s2018_s9   ;;  %p1869_p0 = scmp.ge.s32.totalorder %s2018_s9, 1  ;;  %s2018_s9 = sphi %s2043_s9, %s12_s9  }
   0x2   : > { %p113_p1 = scmp.lt.s32.totalorder %s2018_s9, 3 }
   0x4   : > { %p114_p2 = pnand %p1869_p0, %p113_p1 }
   0x6   : > { %117 = sbr.rel (%p114_p2) target bundleno = 1043 (0x413), region = 28 }
   0xb   : > { %s1870_s11 = sshll.u32 %s1865_s10, 4  ;;  %v2020_v0 = vmov 0   ;;  %v2021_v17 = vmov 1   ;;  %v2022_v18 = vmov 2   ;;  %v1983_v19 = vld [vmem:[%s3094_s1 + $0x8] sm:$0xff]  ;;  %v1982_v21 = vld [vmem:[%s3094_s1] sm:$0xff]  ;;  %v170_v27 = vlaneseq }
   0xc   : > { %2002 = vset.pattern.permute.xlu2 %v2020_v0  ;;  %2001 = vset.pattern.permute.xlu1 %v2020_v0  ;;  %p137_p3 = scmp.lt.s32.totalorder %s1870_s11, 31  ;;  %v2023_v31 = vmov 3   ;;  %v2024_v33 = vmov 0.0   ;;  %vm288_vm2 = vcmask 261120   ;;  %s2025_s20 = smov 32  }
   0xd   : > { %2000 = vset.pattern.permute.xlu0 %v2020_v0  ;;  %319 = vmatpush.bf16.msra.mxu0 %v1983_v19  ;;  %v2164_v28 = vand.u32 127, %v170_v27  ;;  %s2026_s21 = smov 64   ;;  %s2027_s22 = smov 96  }
   0xe   : > { %s3164_s11 = smov (!%p137_p3, %s1870_s11), 31  ;;  %496 = vmatpush.bf16.msra.mxu1 %v1983_v19  ;;  %673 = vmatpush.bf16.msra.mxu2 %v1983_v19 }
   0xf   : > { %s1871_s12 = sshll.u32 %s3164_s11, 3  ;;  %850 = vmatpush.bf16.msra.mxu3 %v1983_v19  ;;  %s1981_s23 = sshll.u32 %s3164_s11, 4 }
  0x10   : > { %s2057_s15 = scalar_lea.vmem %s3093_s0, %s1871_s12  ;;  %s2785_s26 = scalar_lea.vmem %s3095_s2, %s1981_s23 }
  0x11   : > { %v2060_v1 = vld [vmem:[%s2057_s15 + $0x20] sm:$0xff]  ;;  %v2063_v2 = vld [vmem:[%s2057_s15 + $0x10] sm:$0xff]  ;;  %v2072_v4 = vld [vmem:[%s2057_s15 + $0x28] sm:$0xff]  ;;  %320 = vmatpush.bf16.msra.mxu0 %v1982_v21 }
  0x12   : > { %v2066_v3 = vld [vmem:[%s2057_s15] sm:$0xff]  ;;  %185 = vperm.xlu2 %2002, %v2060_v1   ;;  %179 = vperm.xlu1 %2001, %v2063_v2   ;;  %v2075_v5 = vld [vmem:[%s2057_s15 + $0x18] sm:$0xff]  ;;  %v2078_v6 = vld [vmem:[%s2057_s15 + $0x8] sm:$0xff] }
  0x13   : > { %173 = vperm.xlu0 %2000, %v2066_v3   ;;  %v2084_v7 = vld [vmem:[%s2057_s15 + $0x40] sm:$0xff]  ;;  %v2087_v8 = vld [vmem:[%s2057_s15 + $0x38] sm:$0xff]  ;;  %v2090_v9 = vld [vmem:[%s2057_s15 + $0x30] sm:$0xff]  ;;  %497 = vmatpush.bf16.msra.mxu1 %v1982_v21 }
  0x14   : > { %v2096_v10 = vld [vmem:[%s2057_s15 + $0x58] sm:$0xff]  ;;  %v2099_v11 = vld [vmem:[%s2057_s15 + $0x50] sm:$0xff]  ;;  %v2102_v12 = vld [vmem:[%s2057_s15 + $0x48] sm:$0xff]  ;;  %674 = vmatpush.bf16.msra.mxu2 %v1982_v21  ;;  %851 = vmatpush.bf16.msra.mxu3 %v1982_v21 }
  0x15   : > { %v2108_v13 = vld [vmem:[%s2057_s15 + $0x70] sm:$0xff]  ;;  %v2111_v14 = vld [vmem:[%s2057_s15 + $0x68] sm:$0xff]  ;;  %v2114_v15 = vld [vmem:[%s2057_s15 + $0x60] sm:$0xff] }
  0x16   : > { %v2120_v16 = vld [vmem:[%s2057_s15 + $0x78] sm:$0xff] }
  0x1a   : > { %188 = vperm.xlu2 %2002, %v2072_v4   ;;  %182 = vperm.xlu1 %2001, %v2075_v5  }
  0x1b   : > { %176 = vperm.xlu0 %2000, %v2078_v6  }
  0x22   : > { %197 = vperm.xlu2 %2002, %v2084_v7   ;;  %194 = vperm.xlu1 %2001, %v2087_v8  }
  0x23   : > { %191 = vperm.xlu0 %2000, %v2090_v9  }
  0x2a   : > { %206 = vperm.xlu2 %2002, %v2096_v10   ;;  %203 = vperm.xlu1 %2001, %v2099_v11  }
  0x2b   : > { %200 = vperm.xlu0 %2000, %v2102_v12  }
  0x32   : > { %215 = vperm.xlu2 %2002, %v2108_v13   ;;  %212 = vperm.xlu1 %2001, %v2111_v14  }
  0x33   : > { %209 = vperm.xlu0 %2000, %v2114_v15  }
  0x3a   : > { %2004 = vset.pattern.permute.xlu2 %v2021_v17  ;;  %2003 = vset.pattern.permute.xlu1 %v2021_v17 }
  0x3b   : > { %218 = vperm.xlu0 %2000, %v2120_v16   ;;  %366 = vperm.xlu2 %2004, %v2078_v6  }
  0x3c   : > { %363 = vperm.xlu1 %2003, %v2066_v3  }
  0x43   : > { %2005 = vset.pattern.permute.xlu0 %v2021_v17  ;;  %375 = vperm.xlu2 %2004, %v2060_v1  }
  0x44   : > { %372 = vperm.xlu1 %2003, %v2075_v5   ;;  %369 = vperm.xlu0 %2005, %v2063_v2  }
  0x4b   : > { %381 = vperm.xlu2 %2004, %v2090_v9  }
  0x4c   : > { %378 = vperm.xlu1 %2003, %v2072_v4   ;;  %384 = vperm.xlu0 %2005, %v2087_v8  }
  0x53   : > { %390 = vperm.xlu2 %2004, %v2102_v12  }
  0x54   : > { %387 = vperm.xlu1 %2003, %v2084_v7   ;;  %393 = vperm.xlu0 %2005, %v2099_v11  }
  0x5b   : > { %399 = vperm.xlu2 %2004, %v2114_v15  }
  0x5c   : > { %396 = vperm.xlu1 %2003, %v2096_v10   ;;  %402 = vperm.xlu0 %2005, %v2111_v14  }
  0x63   : > { %408 = vperm.xlu2 %2004, %v2120_v16  }
  0x64   : > { %405 = vperm.xlu1 %2003, %v2108_v13   ;;  %2006 = vset.pattern.permute.xlu0 %v2022_v18 }
  0x65   : > { %540 = vperm.xlu0 %2006, %v2066_v3  }
  0x6b   : > { %2008 = vset.pattern.permute.xlu2 %v2022_v18 }
  0x6c   : > { %2007 = vset.pattern.permute.xlu1 %v2022_v18  ;;  %v2143_v20 = vpop.permute.xlu2 %185  ;;  %546 = vperm.xlu2 %2008, %v2063_v2  }
  0x6d   : > { %543 = vperm.xlu1 %2007, %v2078_v6   ;;  %555 = vperm.xlu0 %2006, %v2072_v4   ;;  %vm224_vm5 = vcmp.eq.s32.totalorder %v2164_v28, %v2143_v20 }
  0x6e   : > { %v1879_v49 = vsel %vm224_vm5, 1.0, %v2024_v33 }
  0x74   : > { %v189_v22 = vpop.permute.xlu2 %188  ;;  %552 = vperm.xlu2 %2008, %v2060_v1  }
  0x75   : > { %549 = vperm.xlu1 %2007, %v2075_v5   ;;  %564 = vperm.xlu0 %2006, %v2084_v7   ;;  %vm225_vm6 = vcmp.eq.s32.totalorder %v2164_v28, %v189_v22 }
  0x76   : > { %v1880_v50 = vsel %vm225_vm6, 1.0, %v2024_v33 }
  0x77   : > { %v270_v54 = vpack.c.bf16 %v1880_v50, %v1879_v49 }
  0x7c   : > { %v2154_v23 = vpop.permute.xlu2 %197  ;;  %561 = vperm.xlu2 %2008, %v2087_v8  }
  0x7d   : > { %558 = vperm.xlu1 %2007, %v2090_v9   ;;  %573 = vperm.xlu0 %2006, %v2096_v10   ;;  %vm228_vm15 = vcmp.eq.s32.totalorder %v2164_v28, %v2154_v23 }
  0x84   : > { %v2159_v24 = vpop.permute.xlu2 %206  ;;  %v180_v25 = vpop.permute.xlu1 %179  ;;  %570 = vperm.xlu2 %2008, %v2099_v11  }
  0x85   : > { %567 = vperm.xlu1 %2007, %v2102_v12   ;;  %582 = vperm.xlu0 %2006, %v2108_v13   ;;  %v174_v26 = vpop.permute.xlu0 %173  ;;  %vm222_vm3 = vcmp.eq.s32.totalorder %v2164_v28, %v180_v25 }
  0x86   : > { %vm220_vm0 = vcmp.eq.s32.totalorder %v2164_v28, %v174_v26  ;;  %v1877_v41 = vsel %vm222_vm3, 1.0, %v2024_v33 }
  0x87   : > { %v1875_v34 = vsel %vm220_vm0, 1.0, %v2024_v33 }
  0x8c   : > { %v2167_v29 = vpop.permute.xlu2 %215  ;;  %v183_v30 = vpop.permute.xlu1 %182  ;;  %579 = vperm.xlu2 %2008, %v2111_v14  }
  0x8d   : > { %576 = vperm.xlu1 %2007, %v2114_v15   ;;  %2010 = vset.pattern.permute.xlu0 %v2023_v31  ;;  %v177_v32 = vpop.permute.xlu0 %176  ;;  %vm223_vm4 = vcmp.eq.s32.totalorder %v2164_v28, %v183_v30 }
  0x8e   : > { %vm221_vm1 = vcmp.eq.s32.totalorder %v2164_v28, %v177_v32  ;;  %720 = vperm.xlu0 %2010, %v2078_v6   ;;  %v1878_v42 = vsel %vm223_vm4, 1.0, %v2024_v33  ;;  %vm231_vm4 = vcmp.eq.s32.totalorder %v2164_v28, %v2159_v24 }
  0x8f   : > { %v1876_v35 = vsel %vm221_vm1, 1.0, %v2024_v33  ;;  %v269_v45 = vpack.c.bf16 %v1878_v42, %v1877_v41  ;;  %v1886_v23 = vsel %vm231_vm4, 1.0, %v2024_v33 }
  0x90   : > { %v268_v36 = vpack.c.bf16 %v1876_v35, %v1875_v34 }
  0x92   : > { %1899 = vmatmul.msk.bf16.vlgmr.msra.gmra.mxu0 %vm288_vm2, %v268_v36 }
  0x94   : > { %v195_v37 = vpop.permute.xlu1 %194  ;;  %2009 = vset.pattern.permute.xlu2 %v2023_v31 }
  0x95   : > { %585 = vperm.xlu1 %2007, %v2120_v16   ;;  %v192_v38 = vpop.permute.xlu0 %191  ;;  %v367_v39 = vpop.permute.xlu2 %366  ;;  %717 = vperm.xlu2 %2009, %v2066_v3   ;;  %vm227_vm9 = vcmp.eq.s32.totalorder %v2164_v28, %v195_v37 }
  0x96   : > { %735 = vperm.xlu0 %2010, %v2090_v9   ;;  %vm411_vm7 = vcmp.eq.s32.totalorder %v2164_v28, %v367_v39  ;;  %vm226_vm10 = vcmp.eq.s32.totalorder %v2164_v28, %v192_v38  ;;  %v1882_v61 = vsel %vm227_vm9, 1.0, %v2024_v33 }
  0x97   : > { %v1908_v55 = vsel %vm411_vm7, 1.0, %v2024_v33  ;;  %v1881_v62 = vsel %vm226_vm10, 1.0, %v2024_v33 }
  0x98   : > { %v271_v3 = vpack.c.bf16 %v1882_v61, %v1881_v62 }
  0x9c   : > { %v2181_v40 = vpop.permute.xlu1 %203 }
  0x9d   : > { %2011 = vset.pattern.permute.xlu1 %v2023_v31  ;;  %v201_v43 = vpop.permute.xlu0 %200  ;;  %v2185_v44 = vpop.permute.xlu2 %375  ;;  %726 = vperm.xlu2 %2009, %v2075_v5   ;;  %vm230_vm1 = vcmp.eq.s32.totalorder %v2164_v28, %v2181_v40 }
  0x9e   : > { %723 = vperm.xlu1 %2011, %v2063_v2   ;;  %744 = vperm.xlu0 %2010, %v2102_v12   ;;  %vm229_vm13 = vcmp.eq.s32.totalorder %v2164_v28, %v201_v43  ;;  %vm414_vm0 = vcmp.eq.s32.totalorder %v2164_v28, %v2185_v44  ;;  %v1885_v20 = vsel %vm230_vm1, 1.0, %v2024_v33 }
  0x9f   : > { %v1884_v9 = vsel %vm229_vm13, 1.0, %v2024_v33  ;;  %v273_v26 = vpack.c.bf16 %v1886_v23, %v1885_v20 }
  0xa2   : > { %1900 = vmatmul.msk.bf16.gmra.mxu0 %vm288_vm2, %v269_v45 }
  0xa4   : > { %v2191_v46 = vpop.permute.xlu1 %212 }
  0xa5   : > { %v2193_v47 = vpop.permute.xlu0 %209  ;;  %v2195_v48 = vpop.permute.xlu2 %381  ;;  %732 = vperm.xlu2 %2009, %v2072_v4  }
  0xa6   : > { %729 = vperm.xlu1 %2011, %v2060_v1   ;;  %753 = vperm.xlu0 %2010, %v2114_v15   ;;  %v1911_v15 = vsel %vm414_vm0, 1.0, %v2024_v33  ;;  %vm416_vm5 = vcmp.eq.s32.totalorder %v2164_v28, %v2195_v48  ;;  %vm232_vm9 = vcmp.eq.s32.totalorder %v2164_v28, %v2193_v47  ;;  %vm234_vm0 = vcmp.eq.s32.totalorder %v2164_v28, %v2167_v29 }
  0xa7   : > { %v1913_v27 = vsel %vm416_vm5, 1.0, %v2024_v33  ;;  %v1887_v39 = vsel %vm232_vm9, 1.0, %v2024_v33 }
  0xad   : > { %v2206_v51 = vpop.permute.xlu0 %218  ;;  %v2208_v52 = vpop.permute.xlu2 %390  ;;  %741 = vperm.xlu2 %2009, %v2084_v7  }
  0xae   : > { %738 = vperm.xlu1 %2011, %v2087_v8   ;;  %v364_v53 = vpop.permute.xlu1 %363  ;;  %762 = vperm.xlu0 %2010, %v2120_v16  }
  0xaf   : > { %vm410_vm8 = vcmp.eq.s32.totalorder %v2164_v28, %v364_v53 }
  0xb0   : > { %v1907_v56 = vsel %vm410_vm8, 1.0, %v2024_v33  ;;  %vm233_vm8 = vcmp.eq.s32.totalorder %v2164_v28, %v2191_v46 }
  0xb1   : > { %v458_v57 = vpack.c.bf16 %v1908_v55, %v1907_v56  ;;  %v1888_v38 = vsel %vm233_vm8, 1.0, %v2024_v33 }
  0xb2   : > { %1901 = vmatmul.msk.bf16.gmra.mxu0 %vm288_vm2, %v270_v54  ;;  %v274_v43 = vpack.c.bf16 %v1888_v38, %v1887_v39 }
  0xb3   : > { %1923 = vmatmul.msk.bf16.vlgmr.msra.gmra.mxu1 %vm288_vm2, %v458_v57 }
  0xb5   : > { %v2218_v58 = vpop.permute.xlu2 %399  ;;  %750 = vperm.xlu2 %2009, %v2096_v10  }
  0xb6   : > { %747 = vperm.xlu1 %2011, %v2099_v11   ;;  %v373_v59 = vpop.permute.xlu1 %372  ;;  %v370_v60 = vpop.permute.xlu0 %369  ;;  %vm422_vm9 = vcmp.eq.s32.totalorder %v2164_v28, %v2218_v58 }
  0xb7   : > { %vm413_vm11 = vcmp.eq.s32.totalorder %v2164_v28, %v373_v59  ;;  %vm412_vm12 = vcmp.eq.s32.totalorder %v2164_v28, %v370_v60 }
  0xb8   : > { %v1910_v63 = vsel %vm413_vm11, 1.0, %v2024_v33  ;;  %v1909_v0 = vsel %vm412_vm12, 1.0, %v2024_v33  ;;  %vm419_vm12 = vcmp.eq.s32.totalorder %v2164_v28, %v2208_v52 }
  0xb9   : > { %v459_v5 = vpack.c.bf16 %v1910_v63, %v1909_v0  ;;  %v1916_v44 = vsel %vm419_vm12, 1.0, %v2024_v33 }
  0xbd   : > { %759 = vperm.xlu2 %2009, %v2108_v13   ;;  %v2232_v4 = vpop.permute.xlu2 %408  ;;  %v1883_v13 = vsel %vm228_vm15, 1.0, %v2024_v33 }
  0xbe   : > { %756 = vperm.xlu1 %2011, %v2111_v14   ;;  %v379_v1 = vpop.permute.xlu1 %378  ;;  %v385_v2 = vpop.permute.xlu0 %384  ;;  %v272_v14 = vpack.c.bf16 %v1884_v9, %v1883_v13 }
  0xbf   : > { %vm415_vm14 = vcmp.eq.s32.totalorder %v2164_v28, %v379_v1  ;;  %vm417_vm3 = vcmp.eq.s32.totalorder %v2164_v28, %v385_v2 }
  0xc0   : > { %v1912_v10 = vsel %vm415_vm14, 1.0, %v2024_v33  ;;  %v1914_v21 = vsel %vm417_vm3, 1.0, %v2024_v33  ;;  %vm235_vm14 = vcmp.eq.s32.totalorder %v2164_v28, %v2206_v51  ;;  %v1889_v51 = vsel %vm234_vm0, 1.0, %v2024_v33 }
  0xc1   : > { %v460_v16 = vpack.c.bf16 %v1912_v10, %v1911_v15  ;;  %v461_v30 = vpack.c.bf16 %v1914_v21, %v1913_v27  ;;  %v1890_v54 = vsel %vm235_vm14, 1.0, %v2024_v33 }
  0xc2   : > { %1902 = vmatmul.msk.bf16.gmra.mxu0 %vm288_vm2, %v271_v3  ;;  %v275_v57 = vpack.c.bf16 %v1890_v54, %v1889_v51 }
  0xc3   : > { %1924 = vmatmul.msk.bf16.gmra.mxu1 %vm288_vm2, %v459_v5 }
  0xc6   : > { %v388_v6 = vpop.permute.xlu1 %387  ;;  %v2236_v7 = vpop.permute.xlu0 %393 }
  0xc7   : > { %v547_v8 = vpop.permute.xlu2 %546  ;;  %vm418_vm10 = vcmp.eq.s32.totalorder %v2164_v28, %v388_v6  ;;  %vm420_vm3 = vcmp.eq.s32.totalorder %v2164_v28, %v2236_v7 }
  0xc8   : > { %v1915_v40 = vsel %vm418_vm10, 1.0, %v2024_v33  ;;  %vm589_vm13 = vcmp.eq.s32.totalorder %v2164_v28, %v547_v8  ;;  %v1917_v59 = vsel %vm420_vm3, 1.0, %v2024_v33  ;;  %v1919_v8 = vsel %vm422_vm9, 1.0, %v2024_v33 }
  0xc9   : > { %v462_v46 = vpack.c.bf16 %v1916_v44, %v1915_v40  ;;  %v1933_v47 = vsel %vm589_vm13, 1.0, %v2024_v33 }
  0xce   : > { %v2246_v11 = vpop.permute.xlu1 %396  ;;  %v2248_v12 = vpop.permute.xlu0 %402 }
  0xcf   : > { %v2254_v17 = vpop.permute.xlu2 %552  ;;  %vm421_vm15 = vcmp.eq.s32.totalorder %v2164_v28, %v2246_v11 }
  0xd0   : > { %v1918_v55 = vsel %vm421_vm15, 1.0, %v2024_v33  ;;  %vm591_vm5 = vcmp.eq.s32.totalorder %v2164_v28, %v2254_v17  ;;  %vm425_vm15 = vcmp.eq.s32.totalorder %v2164_v28, %v2232_v4 }
  0xd1   : > { %v463_v62 = vpack.c.bf16 %v1918_v55, %v1917_v59  ;;  %v1935_v63 = vsel %vm591_vm5, 1.0, %v2024_v33  ;;  %v1922_v20 = vsel %vm425_vm15, 1.0, %v2024_v33 }
  0xd2   : > { %1903 = vmatmul.msk.bf16.gmra.mxu0 %vm288_vm2, %v272_v14 }
  0xd3   : > { %1925 = vmatmul.msk.bf16.gmra.mxu1 %vm288_vm2, %v460_v16 }
  0xd6   : > { %v2256_v18 = vpop.permute.xlu1 %405 }
  0xd7   : > { %v541_v19 = vpop.permute.xlu0 %540  ;;  %v2267_v22 = vpop.permute.xlu2 %561  ;;  %vm424_vm13 = vcmp.eq.s32.totalorder %v2164_v28, %v2256_v18 }
  0xd8   : > { %vm587_vm6 = vcmp.eq.s32.totalorder %v2164_v28, %v541_v19  ;;  %vm594_vm10 = vcmp.eq.s32.totalorder %v2164_v28, %v2267_v22  ;;  %v1921_v17 = vsel %vm424_vm13, 1.0, %v2024_v33 }
  0xd9   : > { %v1931_v31 = vsel %vm587_vm6, 1.0, %v2024_v33  ;;  %v1938_v11 = vsel %vm594_vm10, 1.0, %v2024_v33  ;;  %v465_v21 = vpack.c.bf16 %v1922_v20, %v1921_v17 }
  0xdf   : > { %v544_v25 = vpop.permute.xlu1 %543  ;;  %v556_v24 = vpop.permute.xlu0 %555 }
  0xe0   : > { %vm588_vm7 = vcmp.eq.s32.totalorder %v2164_v28, %v544_v25  ;;  %v2278_v36 = vpop.permute.xlu2 %570  ;;  %vm592_vm1 = vcmp.eq.s32.totalorder %v2164_v28, %v556_v24 }
  0xe1   : > { %v1932_v32 = vsel %vm588_vm7, 1.0, %v2024_v33  ;;  %v1936_v56 = vsel %vm592_vm1, 1.0, %v2024_v33  ;;  %vm423_vm7 = vcmp.eq.s32.totalorder %v2164_v28, %v2248_v12 }
  0xe2   : > { %v635_v34 = vpack.c.bf16 %v1932_v32, %v1931_v31  ;;  %1904 = vmatmul.msk.bf16.gmra.mxu0 %vm288_vm2, %v273_v26  ;;  %v637_v0 = vpack.c.bf16 %v1936_v56, %v1935_v63  ;;  %v1920_v5 = vsel %vm423_vm7, 1.0, %v2024_v33 }
  0xe3   : > { %1926 = vmatmul.msk.bf16.gmra.mxu1 %vm288_vm2, %v461_v30  ;;  %v464_v10 = vpack.c.bf16 %v1920_v5, %v1919_v8 }
  0xe4   : > { %1947 = vmatmul.msk.bf16.vlgmr.msra.gmra.mxu2 %vm288_vm2, %v635_v34 }
  0xe7   : > { %v550_v35 = vpop.permute.xlu1 %549  ;;  %v2280_v37 = vpop.permute.xlu0 %564 }
  0xe8   : > { %vm590_vm11 = vcmp.eq.s32.totalorder %v2164_v28, %v550_v35  ;;  %v2299_v48 = vpop.permute.xlu2 %579  ;;  %vm595_vm1 = vcmp.eq.s32.totalorder %v2164_v28, %v2280_v37 }
  0xe9   : > { %v1934_v41 = vsel %vm590_vm11, 1.0, %v2024_v33  ;;  %v1939_v22 = vsel %vm595_vm1, 1.0, %v2024_v33  ;;  %vm600_vm10 = vcmp.eq.s32.totalorder %v2164_v28, %v2299_v48 }
  0xea   : > { %v636_v49 = vpack.c.bf16 %v1934_v41, %v1933_v47  ;;  %v1944_v41 = vsel %vm600_vm10, 1.0, %v2024_v33 }
  0xef   : > { %v559_v42 = vpop.permute.xlu1 %558  ;;  %v2296_v45 = vpop.permute.xlu0 %573 }
  0xf0   : > { %v718_v53 = vpop.permute.xlu2 %717  ;;  %vm593_vm8 = vcmp.eq.s32.totalorder %v2164_v28, %v559_v42 }
  0xf1   : > { %vm764_vm4 = vcmp.eq.s32.totalorder %v2164_v28, %v718_v53  ;;  %v1937_v7 = vsel %vm593_vm8, 1.0, %v2024_v33 }
  0xf2   : > { %1905 = vmatmul.msk.bf16.gmra.mxu0 %vm288_vm2, %v274_v43  ;;  %v1955_v60 = vsel %vm764_vm4, 1.0, %v2024_v33  ;;  %v638_v12 = vpack.c.bf16 %v1938_v11, %v1937_v7  ;;  %vm598_vm4 = vcmp.eq.s32.totalorder %v2164_v28, %v2296_v45 }
  0xf3   : > { %1927 = vmatmul.msk.bf16.gmra.mxu1 %vm288_vm2, %v462_v46  ;;  %v1942_v24 = vsel %vm598_vm4, 1.0, %v2024_v33 }
  0xf4   : > { %1948 = vmatmul.msk.bf16.gmra.mxu2 %vm288_vm2, %v636_v49 }
  0xf7   : > { %v568_v50 = vpop.permute.xlu1 %567  ;;  %v2304_v52 = vpop.permute.xlu0 %582 }
  0xf8   : > { %v727_v6 = vpop.permute.xlu2 %726  ;;  %vm596_vm14 = vcmp.eq.s32.totalorder %v2164_v28, %v568_v50 }
  0xf9   : > { %vm767_vm11 = vcmp.eq.s32.totalorder %v2164_v28, %v727_v6  ;;  %v1940_v19 = vsel %vm596_vm14, 1.0, %v2024_v33  ;;  %vm601_vm14 = vcmp.eq.s32.totalorder %v2164_v28, %v2304_v52 }
  0xfa   : > { %v1958_v58 = vsel %vm767_vm11, 1.0, %v2024_v33  ;;  %v639_v23 = vpack.c.bf16 %v1940_v19, %v1939_v22  ;;  %v1945_v49 = vsel %vm601_vm14, 1.0, %v2024_v33 }
  0xff   : > { %v2322_v29 = vpop.permute.xlu1 %576 }
 0x100   : > { %v721_v61 = vpop.permute.xlu0 %720  ;;  %v733_v16 = vpop.permute.xlu2 %732  ;;  %vm599_vm8 = vcmp.eq.s32.totalorder %v2164_v28, %v2322_v29 }
 0x101   : > { %vm765_vm6 = vcmp.eq.s32.totalorder %v2164_v28, %v721_v61  ;;  %vm769_vm3 = vcmp.eq.s32.totalorder %v2164_v28, %v733_v16  ;;  %v1943_v39 = vsel %vm599_vm8, 1.0, %v2024_v33 }
 0x102   : > { %v1956_v1 = vsel %vm765_vm6, 1.0, %v2024_v33  ;;  %1906 = vmatmul.msk.bf16.gmra.mxu0 %vm288_vm2, %v275_v57  ;;  %v1960_v4 = vsel %vm769_vm3, 1.0, %v2024_v33  ;;  %vm597_vm6 = vcmp.eq.s32.totalorder %v2164_v28, %v2278_v36  ;;  %v641_v42 = vpack.c.bf16 %v1944_v41, %v1943_v39 }
 0x103   : > { %v812_v2 = vpack.c.bf16 %v1956_v1, %v1955_v60  ;;  %1928 = vmatmul.msk.bf16.gmra.mxu1 %vm288_vm2, %v463_v62  ;;  %v1941_v32 = vsel %vm597_vm6, 1.0, %v2024_v33  ;;  %vm1486_vm6 = vcmask 785408  }
 0x104   : > { %1949 = vmatmul.msk.bf16.gmra.mxu2 %vm288_vm2, %v637_v0  ;;  %v640_v34 = vpack.c.bf16 %v1942_v24, %v1941_v32 }
 0x105   : > { %1971 = vmatmul.msk.bf16.vlgmr.msra.gmra.mxu3 %vm288_vm2, %v812_v2 }
 0x107   : > { %v2333_v3 = vpop.permute.xlu1 %585 }
 0x108   : > { %v736_v27 = vpop.permute.xlu0 %735  ;;  %v742_v38 = vpop.permute.xlu2 %741 }
 0x109   : > { %vm770_vm7 = vcmp.eq.s32.totalorder %v2164_v28, %v736_v27  ;;  %vm772_vm11 = vcmp.eq.s32.totalorder %v2164_v28, %v742_v38 }
 0x10a   : > { %v1961_v35 = vsel %vm770_vm7, 1.0, %v2024_v33  ;;  %v1963_v43 = vsel %vm772_vm11, 1.0, %v2024_v33 }
 0x110   : > { %v724_v9 = vpop.permute.xlu1 %723  ;;  %v745_v36 = vpop.permute.xlu0 %744 }
 0x111   : > { %vm766_vm12 = vcmp.eq.s32.totalorder %v2164_v28, %v724_v9  ;;  %vm773_vm9 = vcmp.eq.s32.totalorder %v2164_v28, %v745_v36  ;;  %v751_v46 = vpop.permute.xlu2 %750 }
 0x112   : > { %v1957_v13 = vsel %vm766_vm12, 1.0, %v2024_v33  ;;  %v1964_v40 = vsel %vm773_vm9, 1.0, %v2024_v33  ;;  %vm602_vm12 = vcmp.eq.s32.totalorder %v2164_v28, %v2333_v3  ;;  %vm775_vm15 = vcmp.eq.s32.totalorder %v2164_v28, %v751_v46 }
 0x113   : > { %v813_v14 = vpack.c.bf16 %v1958_v58, %v1957_v13  ;;  %1929 = vmatmul.msk.bf16.gmra.mxu1 %vm288_vm2, %v464_v10  ;;  %v816_v44 = vpack.c.bf16 %v1964_v40, %v1963_v43  ;;  %v1946_v47 = vsel %vm602_vm12, 1.0, %v2024_v33  ;;  %v1966_v53 = vsel %vm775_vm15, 1.0, %v2024_v33 }
 0x114   : > { %1950 = vmatmul.msk.bf16.gmra.mxu2 %vm288_vm2, %v638_v12  ;;  %v642_v50 = vpack.c.bf16 %v1946_v47, %v1945_v49 }
 0x115   : > { %1972 = vmatmul.msk.bf16.gmra.mxu3 %vm288_vm2, %v813_v14 }
 0x118   : > { %v730_v15 = vpop.permute.xlu1 %729  ;;  %v754_v51 = vpop.permute.xlu0 %753 }
 0x119   : > { %vm768_vm0 = vcmp.eq.s32.totalorder %v2164_v28, %v730_v15  ;;  %vm776_vm1 = vcmp.eq.s32.totalorder %v2164_v28, %v754_v51  ;;  %v760_v60 = vpop.permute.xlu2 %759 }
 0x11a   : > { %v1959_v18 = vsel %vm768_vm0, 1.0, %v2024_v33  ;;  %v1967_v56 = vsel %vm776_vm1, 1.0, %v2024_v33  ;;  %vm778_vm4 = vcmp.eq.s32.totalorder %v2164_v28, %v760_v60  ;;  %v322_v60 = vpop.f32.mrf.mxu0 }
 0x11b   : > { %v814_v25 = vpack.c.bf16 %v1960_v4, %v1959_v18  ;;  %v1969_v63 = vsel %vm778_vm4, 1.0, %v2024_v33 }
 0x120   : > { %v739_v26 = vpop.permute.xlu1 %738  ;;  %v763_v59 = vpop.permute.xlu0 %762 }
 0x121   : > { %vm771_vm5 = vcmp.eq.s32.totalorder %v2164_v28, %v739_v26  ;;  %vm779_vm3 = vcmp.eq.s32.totalorder %v2164_v28, %v763_v59 }
 0x122   : > { %v1962_v30 = vsel %vm771_vm5, 1.0, %v2024_v33  ;;  %v1970_v62 = vsel %vm779_vm3, 1.0, %v2024_v33  ;;  %vm1469_vm5 = vcmask 523264  }
 0x123   : > { %1930 = vmatmul.msk.bf16.gmra.mxu1 %vm288_vm2, %v465_v21  ;;  %v815_v37 = vpack.c.bf16 %v1962_v30, %v1961_v35  ;;  %v819_v0 = vpack.c.bf16 %v1970_v62, %v1969_v63 }
 0x124   : > { %1951 = vmatmul.msk.bf16.gmra.mxu2 %vm288_vm2, %v639_v23 }
 0x125   : > { %1973 = vmatmul.msk.bf16.gmra.mxu3 %vm288_vm2, %v814_v25 }
 0x128   : > { %v748_v45 = vpop.permute.xlu1 %747 }
 0x129   : > { %vm774_vm13 = vcmp.eq.s32.totalorder %v2164_v28, %v748_v45 }
 0x12a   : > { %v1965_v48 = vsel %vm774_vm13, 1.0, %v2024_v33 }
 0x12b   : > { %v817_v54 = vpack.c.bf16 %v1966_v53, %v1965_v48 }
 0x130   : > { %v2379_v31 = vpop.f32.mrf.mxu1  ;;  %v757_v55 = vpop.permute.xlu1 %756 }
 0x131   : > { %3121 = vst [vmem:[#allocation2_spill] sm:$0xff] %v2379_v31  ;;  %909 = vrot.lane.b32.xlu1 %v2379_v31, %s2025_s20  ;;  %vm777_vm0 = vcmp.eq.s32.totalorder %v2164_v28, %v757_v55 }
 0x132   : > { %v1968_v52 = vsel %vm777_vm0, 1.0, %v2024_v33 }
 0x133   : > { %v818_v29 = vpack.c.bf16 %v1968_v52, %v1967_v56 }
 0x134   : > { %1952 = vmatmul.msk.bf16.gmra.mxu2 %vm288_vm2, %v640_v34 }
 0x135   : > { %1974 = vmatmul.msk.bf16.gmra.mxu3 %vm288_vm2, %v815_v37 }
 0x138   : > { %v2424_v61 = vpop.f32.mrf.mxu1 }
 0x140   : > { %v2445_v33 = vpop.f32.mrf.mxu1 }
 0x144   : > { %1953 = vmatmul.msk.bf16.gmra.mxu2 %vm288_vm2, %v641_v42 }
 0x145   : > { %1975 = vmatmul.msk.bf16.gmra.mxu3 %vm288_vm2, %v816_v44 }
 0x148   : > { %v2457_v6 = vpop.f32.mrf.mxu1 }
 0x150   : > { %v2469_v9 = vpop.f32.mrf.mxu1 }
 0x154   : > { %1954 = vmatmul.msk.bf16.gmra.mxu2 %vm288_vm2, %v642_v50 }
 0x155   : > { %1976 = vmatmul.msk.bf16.gmra.mxu3 %vm288_vm2, %v817_v54 }
 0x158   : > { %v2487_v12 = vpop.f32.mrf.mxu1 }
 0x160   : > { %v2499_v14 = vpop.f32.mrf.mxu1 }
 0x165   : > { %1977 = vmatmul.msk.bf16.gmra.mxu3 %vm288_vm2, %v818_v29 }
 0x167   : > { %v2416_v57 = vpop.f32.mrf.mxu2 }
 0x168   : > { %3122 = vst [vmem:[#allocation3_spill] sm:$0xff] %v2416_v57  ;;  %1133 = vrot.lane.b32.xlu1 %v2416_v57, %s2025_s20  ;;  %989 = vrot.lane.b32.xlu2 %v2416_v57, %s2026_s21  ;;  %v2511_v17 = vpop.f32.mrf.mxu1 }
 0x16f   : > { %v2431_v1 = vpop.f32.mrf.mxu2 }
 0x170   : > { %911 = vrot.lane.b32.xlu2 %v2424_v61, %s2025_s20  ;;  %3123 = vst [vmem:[#allocation4_spill] sm:$0xff] %v2431_v1  ;;  %v2529_v18 = vpop.f32.mrf.mxu1 }
 0x175   : > { %1978 = vmatmul.msk.bf16.gmra.mxu3 %vm288_vm2, %v819_v0 }
 0x177   : > { %v2447_v3 = vpop.f32.mrf.mxu2 }
 0x178   : > { %1135 = vrot.lane.b32.xlu2 %v2431_v1, %s2025_s20  ;;  %3124 = vst [vmem:[#allocation5_spill] sm:$0xff] %v2447_v3  ;;  %v2543_v4 = vpop.f32.mrf.mxu1 }
 0x17f   : > { %v2459_v7 = vpop.f32.mrf.mxu2 }
 0x180   : > { %3125 = vst [vmem:[#allocation6_spill] sm:$0xff] %v2459_v7  ;;  %v2557_v24 = vpop.f32.mrf.mxu1 }
 0x187   : > { %v2477_v10 = vpop.f32.mrf.mxu2 }
 0x188   : > { %v2435_v2 = vpop.f32.mrf.mxu3  ;;  %3126 = vst [vmem:[#allocation7_spill] sm:$0xff] %v2477_v10  ;;  %v2579_v36 = vpop.f32.mrf.mxu1 }
 0x189   : > { %1069 = vrot.lane.b32.xlu0 %v2435_v2, %s2027_s22 }
 0x18f   : > { %v2489_v58 = vpop.f32.mrf.mxu2 }
 0x190   : > { %v2439_v28 = vpop.f32.mrf.mxu3  ;;  %3127 = vst [vmem:[#allocation8_spill] sm:$0xff] %v2489_v58  ;;  %v2593_v43 = vpop.f32.mrf.mxu1 }
 0x191   : > { %991 = vrot.lane.b32.xlu0 %v2431_v1, %s2026_s21  ;;  %1071 = vrot.lane.b32.xlu1 %v2439_v28, %s2027_s22 }
 0x197   : > { %v2501_v15 = vpop.f32.mrf.mxu2 }
 0x198   : > { %v2449_v5 = vpop.f32.mrf.mxu3  ;;  %3128 = vst [vmem:[#allocation9_spill] sm:$0xff] %v2501_v15  ;;  %v2607_v49 = vpop.f32.mrf.mxu1 }
 0x199   : > { %913 = vrot.lane.b32.xlu0 %v2445_v33, %s2025_s20  ;;  %993 = vrot.lane.b32.xlu1 %v2447_v3, %s2026_s21 }
 0x19a   : > { %1073 = vrot.lane.b32.xlu2 %v2449_v5, %s2027_s22 }
 0x19f   : > { %v2519_v19 = vpop.f32.mrf.mxu2 }
 0x1a0   : > { %v2467_v8 = vpop.f32.mrf.mxu3  ;;  %3129 = vst [vmem:[#allocation10_spill] sm:$0xff] %v2519_v19  ;;  %v2629_v59 = vpop.f32.mrf.mxu1 }
 0x1a1   : > { %1137 = vrot.lane.b32.xlu0 %v2447_v3, %s2025_s20  ;;  %915 = vrot.lane.b32.xlu1 %v2457_v6, %s2025_s20 }
 0x1a2   : > { %995 = vrot.lane.b32.xlu2 %v2459_v7, %s2026_s21 }
 0x1a3   : > { %v910_v35 = vpop.permute.xlu1 %909 }
 0x1a4   : > { %v957_v62 = vmul.f32 %v910_v35, %v322_v60 }
 0x1a7   : > { %v2531_v21 = vpop.f32.mrf.mxu2 }
 0x1a8   : > { %v2479_v11 = vpop.f32.mrf.mxu3  ;;  %3130 = vst [vmem:[#allocation11_spill] sm:$0xff] %v2531_v21 }
 0x1a9   : > { %1139 = vrot.lane.b32.xlu1 %v2459_v7, %s2025_s20  ;;  %1075 = vrot.lane.b32.xlu0 %v2467_v8, %s2027_s22 }
 0x1aa   : > { %917 = vrot.lane.b32.xlu2 %v2469_v9, %s2025_s20 }
 0x1af   : > { %v2545_v25 = vpop.f32.mrf.mxu2 }
 0x1b0   : > { %v2491_v13 = vpop.f32.mrf.mxu3  ;;  %3131 = vst [vmem:[#allocation12_spill] sm:$0xff] %v2545_v25 }
 0x1b1   : > { %997 = vrot.lane.b32.xlu0 %v2477_v10, %s2026_s21  ;;  %1077 = vrot.lane.b32.xlu1 %v2479_v11, %s2027_s22 }
 0x1b2   : > { %1141 = vrot.lane.b32.xlu2 %v2477_v10, %s2025_s20 }
 0x1b7   : > { %v2567_v32 = vpop.f32.mrf.mxu2 }
 0x1b8   : > { %v2509_v16 = vpop.f32.mrf.mxu3  ;;  %3132 = vst [vmem:[#allocation13_spill] sm:$0xff] %v2567_v32 }
 0x1b9   : > { %919 = vrot.lane.b32.xlu0 %v2487_v12, %s2025_s20  ;;  %999 = vrot.lane.b32.xlu1 %v2489_v58, %s2026_s21 }
 0x1ba   : > { %1079 = vrot.lane.b32.xlu2 %v2491_v13, %s2027_s22 }
 0x1bf   : > { %v2581_v38 = vpop.f32.mrf.mxu2 }
 0x1c0   : > { %v2521_v20 = vpop.f32.mrf.mxu3  ;;  %3133 = vst [vmem:[#allocation14_spill] sm:$0xff] %v2581_v38 }
 0x1c1   : > { %1143 = vrot.lane.b32.xlu0 %v2489_v58, %s2025_s20  ;;  %921 = vrot.lane.b32.xlu1 %v2499_v14, %s2025_s20 }
 0x1c2   : > { %1001 = vrot.lane.b32.xlu2 %v2501_v15, %s2026_s21  ;;  %v2533_v22 = vpop.permute.xlu2 %989 }
 0x1c7   : > { %v2595_v44 = vpop.f32.mrf.mxu2 }
 0x1c8   : > { %v2535_v23 = vpop.f32.mrf.mxu3  ;;  %3134 = vst [vmem:[#allocation15_spill] sm:$0xff] %v2595_v44 }
 0x1c9   : > { %1145 = vrot.lane.b32.xlu1 %v2501_v15, %s2025_s20  ;;  %1081 = vrot.lane.b32.xlu0 %v2509_v16, %s2027_s22  ;;  %v1037_v15 = vmul.f32 %v2533_v22, %v322_v60 }
 0x1ca   : > { %923 = vrot.lane.b32.xlu2 %v2511_v17, %s2025_s20  ;;  %v2551_v26 = vpop.permute.xlu2 %911 }
 0x1cf   : > { %v2617_v55 = vpop.f32.mrf.mxu2 }
 0x1d0   : > { %v2555_v27 = vpop.f32.mrf.mxu3  ;;  %3136 = vst [vmem:[#allocation17_spill] sm:$0xff] %v2617_v55 }
 0x1d1   : > { %1003 = vrot.lane.b32.xlu0 %v2519_v19, %s2026_s21  ;;  %1083 = vrot.lane.b32.xlu1 %v2521_v20, %s2027_s22 }
 0x1d2   : > { %1147 = vrot.lane.b32.xlu2 %v2519_v19, %s2025_s20  ;;  %v2565_v30 = vpop.permute.xlu2 %1135 }
 0x1d7   : > { %v2631_v63 = vpop.f32.mrf.mxu2 }
 0x1d8   : > { %v2569_v34 = vpop.f32.mrf.mxu3  ;;  %3138 = vst [vmem:[#allocation19_spill] sm:$0xff] %v2631_v63 }
 0x1d9   : > { %925 = vrot.lane.b32.xlu0 %v2529_v18, %s2025_s20  ;;  %1005 = vrot.lane.b32.xlu1 %v2531_v21, %s2026_s21 }
 0x1da   : > { %1085 = vrot.lane.b32.xlu2 %v2535_v23, %s2027_s22  ;;  %v1134_v40 = vpop.permute.xlu1 %1133 }
 0x1db   : > { %v1181_v3 = vmul.f32 %v1134_v40, %v2379_v31  ;;  %v1182_v31 = vmul.f32 %v2565_v30, %v2424_v61 }
 0x1df   : > { %v2664_v10 = vpop.f32.mrf.mxu2 }
 0x1e0   : > { %v2583_v39 = vpop.f32.mrf.mxu3  ;;  %3140 = vst [vmem:[#allocation21_spill] sm:$0xff] %v2664_v10 }
 0x1e1   : > { %1149 = vrot.lane.b32.xlu0 %v2531_v21, %s2025_s20  ;;  %927 = vrot.lane.b32.xlu1 %v2543_v4, %s2025_s20  ;;  %v2640_v21 = vpop.f32.mrf.mxu1 }
 0x1e2   : > { %1007 = vrot.lane.b32.xlu2 %v2545_v25, %s2026_s21 }
 0x1e8   : > { %v2605_v48 = vpop.f32.mrf.mxu3 }
 0x1e9   : > { %1151 = vrot.lane.b32.xlu1 %v2545_v25, %s2025_s20  ;;  %1087 = vrot.lane.b32.xlu0 %v2555_v27, %s2027_s22  ;;  %3135 = vst [vmem:[#allocation16_spill] sm:$0xff] %v2605_v48 }
 0x1ea   : > { %929 = vrot.lane.b32.xlu2 %v2557_v24, %s2025_s20 }
 0x1f0   : > { %v2619_v51 = vpop.f32.mrf.mxu3 }
 0x1f1   : > { %1009 = vrot.lane.b32.xlu0 %v2567_v32, %s2026_s21  ;;  %1089 = vrot.lane.b32.xlu1 %v2569_v34, %s2027_s22  ;;  %3137 = vst [vmem:[#allocation18_spill] sm:$0xff] %v2619_v51 }
 0x1f2   : > { %1153 = vrot.lane.b32.xlu2 %v2567_v32, %s2025_s20 }
 0x1f4   : > { %v2577_v37 = vpop.permute.xlu2 %1073 }
 0x1f8   : > { %v2642_v25 = vpop.f32.mrf.mxu3 }
 0x1f9   : > { %931 = vrot.lane.b32.xlu0 %v2579_v36, %s2025_s20  ;;  %1011 = vrot.lane.b32.xlu1 %v2581_v38, %s2026_s21  ;;  %3139 = vst [vmem:[#allocation20_spill] sm:$0xff] %v2642_v25 }
 0x1fa   : > { %1091 = vrot.lane.b32.xlu2 %v2583_v39, %s2027_s22 }
 0x1fb   : > { %v1070_v41 = vpop.permute.xlu0 %1069 }
 0x1fc   : > { %v2591_v42 = vpop.permute.xlu2 %995 }
 0x201   : > { %1155 = vrot.lane.b32.xlu0 %v2581_v38, %s2025_s20  ;;  %933 = vrot.lane.b32.xlu1 %v2593_v43, %s2025_s20 }
 0x202   : > { %1013 = vrot.lane.b32.xlu2 %v2595_v44, %s2026_s21 }
 0x203   : > { %v1072_v45 = vpop.permute.xlu1 %1071  ;;  %v992_v46 = vpop.permute.xlu0 %991 }
 0x204   : > { %v2603_v47 = vpop.permute.xlu2 %917 }
 0x209   : > { %1157 = vrot.lane.b32.xlu1 %v2595_v44, %s2025_s20  ;;  %1093 = vrot.lane.b32.xlu0 %v2605_v48, %s2027_s22 }
 0x20a   : > { %935 = vrot.lane.b32.xlu2 %v2607_v49, %s2025_s20 }
 0x20b   : > { %v994_v50 = vpop.permute.xlu1 %993  ;;  %v914_v53 = vpop.permute.xlu0 %913 }
 0x20c   : > { %v2615_v54 = vpop.permute.xlu2 %1141 }
 0x211   : > { %1015 = vrot.lane.b32.xlu0 %v2617_v55, %s2026_s21  ;;  %1095 = vrot.lane.b32.xlu1 %v2619_v51, %s2027_s22 }
 0x212   : > { %1159 = vrot.lane.b32.xlu2 %v2617_v55, %s2025_s20  ;;  %v1117_v55 = vmul.f32 %v1070_v41, %v322_v60 }
 0x213   : > { %v916_v52 = vpop.permute.xlu1 %915  ;;  %v1138_v56 = vpop.permute.xlu0 %1137 }
 0x214   : > { %v2627_v29 = vpop.permute.xlu2 %1079 }
 0x219   : > { %937 = vrot.lane.b32.xlu0 %v2629_v59, %s2025_s20  ;;  %1017 = vrot.lane.b32.xlu1 %v2631_v63, %s2026_s21 }
 0x21a   : > { %1213 = vrot.lane.b32.xlu2 %v957_v62, %s2027_s22 }
 0x21b   : > { %v1140_v0 = vpop.permute.xlu1 %1139  ;;  %v1076_v38 = vpop.permute.xlu0 %1075 }
 0x21c   : > { %v2638_v44 = vpop.permute.xlu2 %1001 }
 0x221   : > { %1161 = vrot.lane.b32.xlu0 %v2631_v63, %s2025_s20  ;;  %939 = vrot.lane.b32.xlu1 %v2640_v21, %s2025_s20  ;;  %v324_v63 = vpop.f32.mrf.mxu0 }
 0x222   : > { %1097 = vrot.lane.b32.xlu2 %v2642_v25, %s2027_s22  ;;  %v958_v19 = vmul.f32 %v2551_v26, %v324_v63  ;;  %v1038_v41 = vmul.f32 %v992_v46, %v324_v63  ;;  %v1118_v26 = vmul.f32 %v1072_v45, %v324_v63 }
 0x223   : > { %v2650_v35 = vpop.permute.xlu1 %1077  ;;  %v998_v62 = vpop.permute.xlu0 %997 }
 0x224   : > { %v2652_v58 = vpop.permute.xlu2 %923 }
 0x229   : > { %1277 = vrot.lane.b32.xlu0 %v1037_v15, %s2027_s22  ;;  %1341 = vrot.lane.b32.xlu1 %v1117_v55, %s2027_s22  ;;  %v327_v22 = vpop.f32.mrf.mxu0  ;;  %v2677_v55 = vpop.f32.mrf.mxu3 }
 0x22a   : > { %1405 = vrot.lane.b32.xlu2 %v1181_v3, %s2025_s20  ;;  %3141 = vst [vmem:[#allocation22_spill] sm:$0xff] %v2677_v55  ;;  %v959_v46 = vmul.f32 %v914_v53, %v327_v22  ;;  %v1039_v25 = vmul.f32 %v994_v50, %v327_v22 }
 0x22b   : > { %v2659_v7 = vpop.permute.xlu1 %999  ;;  %v920_v32 = vpop.permute.xlu0 %919 }
 0x22c   : > { %v2661_v57 = vpop.permute.xlu2 %1147 }
 0x231   : > { %1215 = vrot.lane.b32.xlu0 %v958_v19, %s2027_s22  ;;  %1163 = vrot.lane.b32.xlu1 %v2664_v10, %s2025_s20  ;;  %v329_v1 = vpop.f32.mrf.mxu0 }
 0x232   : > { %1019 = vrot.lane.b32.xlu2 %v2664_v10, %s2026_s21  ;;  %v960_v48 = vmul.f32 %v916_v52, %v329_v1  ;;  %v1040_v50 = vmul.f32 %v2591_v42, %v329_v1  ;;  %v1120_v53 = vmul.f32 %v1076_v38, %v329_v1 }
 0x233   : > { %v2671_v15 = vpop.permute.xlu1 %921  ;;  %v2673_v3 = vpop.permute.xlu0 %1143 }
 0x234   : > { %v2675_v40 = vpop.permute.xlu2 %1085 }
 0x239   : > { %1099 = vrot.lane.b32.xlu0 %v2677_v55, %s2027_s22  ;;  %1279 = vrot.lane.b32.xlu1 %v1038_v41, %s2027_s22  ;;  %v1183_v55 = vmul.f32 %v1138_v56, %v2445_v33  ;;  %v332_v51 = vpop.f32.mrf.mxu0 }
 0x23a   : > { %1343 = vrot.lane.b32.xlu2 %v1118_v26, %s2027_s22  ;;  %v1119_v26 = vmul.f32 %v2577_v37, %v327_v22  ;;  %v1184_v37 = vmul.f32 %v1140_v0, %v2457_v6  ;;  %v1121_v1 = vmul.f32 %v2650_v35, %v332_v51 }
 0x23b   : > { %v2683_v19 = vpop.permute.xlu1 %1145  ;;  %v1082_v60 = vpop.permute.xlu0 %1081 }
 0x23c   : > { %v2685_v10 = vpop.permute.xlu2 %1007 }
 0x241   : > { %1407 = vrot.lane.b32.xlu0 %v1182_v31, %s2025_s20  ;;  %1217 = vrot.lane.b32.xlu1 %v959_v46, %s2027_s22  ;;  %v334_v52 = vpop.f32.mrf.mxu0  ;;  %v1041_v46 = vmul.f32 %v998_v62, %v332_v51 }
 0x242   : > { %1281 = vrot.lane.b32.xlu2 %v1039_v25, %s2027_s22 }
 0x243   : > { %v2692_v45 = vpop.permute.xlu1 %1083  ;;  %v1004_v63 = vpop.permute.xlu0 %1003 }
 0x244   : > { %v2694_v41 = vpop.permute.xlu2 %929 }
 0x249   : > { %1345 = vrot.lane.b32.xlu0 %v1119_v26, %s2027_s22  ;;  %1409 = vrot.lane.b32.xlu1 %v1183_v55, %s2025_s20  ;;  %v961_v55 = vmul.f32 %v2603_v47, %v332_v51  ;;  %v337_v0 = vpop.f32.mrf.mxu0  ;;  %v1042_v47 = vmul.f32 %v2659_v7, %v334_v52 }
 0x24a   : > { %1219 = vrot.lane.b32.xlu2 %v960_v48, %s2027_s22 }
 0x24b   : > { %v2701_v31 = vpop.permute.xlu1 %1005  ;;  %v926_v25 = vpop.permute.xlu0 %925 }
 0x24c   : > { %v2703_v30 = vpop.permute.xlu2 %1153 }
 0x251   : > { %1283 = vrot.lane.b32.xlu0 %v1040_v50, %s2027_s22  ;;  %1347 = vrot.lane.b32.xlu1 %v1120_v53, %s2027_s22  ;;  %v1185_v50 = vmul.f32 %v2615_v54, %v2469_v9  ;;  %v962_v53 = vmul.f32 %v920_v32, %v334_v52  ;;  %v963_v32 = vmul.f32 %v2671_v15, %v337_v0 }
 0x252   : > { %1411 = vrot.lane.b32.xlu2 %v1184_v37, %s2025_s20  ;;  %v339_v37 = vpop.f32.mrf.mxu0 }
 0x253   : > { %v2710_v56 = vpop.permute.xlu1 %927  ;;  %v2712_v48 = vpop.permute.xlu0 %1149 }
 0x254   : > { %v2714_v22 = vpop.permute.xlu2 %1091 }
 0x259   : > { %1221 = vrot.lane.b32.xlu0 %v961_v55, %s2027_s22  ;;  %1285 = vrot.lane.b32.xlu1 %v1041_v46, %s2027_s22  ;;  %v1122_v55 = vmul.f32 %v2627_v29, %v334_v52  ;;  %v1186_v46 = vmul.f32 %v2673_v3, %v2487_v12  ;;  %v1187_v29 = vmul.f32 %v2683_v19, %v2499_v14 }
 0x25a   : > { %1349 = vrot.lane.b32.xlu2 %v1121_v1, %s2027_s22 }
 0x25b   : > { %v2721_v38 = vpop.permute.xlu1 %1151  ;;  %v1088_v42 = vpop.permute.xlu0 %1087 }
 0x25c   : > { %v2723_v26 = vpop.permute.xlu2 %1013 }
 0x261   : > { %1413 = vrot.lane.b32.xlu0 %v1185_v50, %s2025_s20  ;;  %1223 = vrot.lane.b32.xlu1 %v962_v53, %s2027_s22  ;;  %v1043_v50 = vmul.f32 %v2638_v44, %v337_v0  ;;  %v1123_v53 = vmul.f32 %v1082_v60, %v337_v0  ;;  %v1124_v44 = vmul.f32 %v2692_v45, %v339_v37 }
 0x262   : > { %1287 = vrot.lane.b32.xlu2 %v1042_v47, %s2027_s22  ;;  %v342_v47 = vpop.f32.mrf.mxu0 }
 0x263   : > { %v1090_v51 = vpop.permute.xlu1 %1089  ;;  %v1010_v35 = vpop.permute.xlu0 %1009 }
 0x264   : > { %v2731_v62 = vpop.permute.xlu2 %935 }
 0x269   : > { %1351 = vrot.lane.b32.xlu0 %v1122_v55, %s2027_s22  ;;  %1415 = vrot.lane.b32.xlu1 %v1186_v46, %s2025_s20  ;;  %v964_v55 = vmul.f32 %v2652_v58, %v339_v37  ;;  %v1044_v46 = vmul.f32 %v1004_v63, %v339_v37  ;;  %v1045_v58 = vmul.f32 %v2701_v31, %v342_v47 }
 0x26a   : > { %1225 = vrot.lane.b32.xlu2 %v963_v32, %s2027_s22  ;;  %v344_v19 = vpop.f32.mrf.mxu0 }
 0x26b   : > { %v1012_v7 = vpop.permute.xlu1 %1011  ;;  %v932_v54 = vpop.permute.xlu0 %931 }
 0x26c   : > { %v2740_v1 = vpop.permute.xlu2 %1159 }
 0x271   : > { %1289 = vrot.lane.b32.xlu0 %v1043_v50, %s2027_s22  ;;  %1353 = vrot.lane.b32.xlu1 %v1123_v53, %s2027_s22  ;;  %v1125_v50 = vmul.f32 %v2675_v40, %v342_v47  ;;  %v965_v53 = vmul.f32 %v926_v25, %v342_v47 }
 0x272   : > { %1417 = vrot.lane.b32.xlu2 %v1187_v29, %s2025_s20  ;;  %v347_v37 = vpop.f32.mrf.mxu0 }
 0x273   : > { %v934_v15 = vpop.permute.xlu1 %933  ;;  %v2748_v3 = vpop.permute.xlu0 %1155 }
 0x274   : > { %v1214_v52 = vpop.permute.xlu2 %1213 }
 0x279   : > { %1227 = vrot.lane.b32.xlu0 %v964_v55, %s2027_s22  ;;  %1291 = vrot.lane.b32.xlu1 %v1044_v46, %s2027_s22  ;;  %v1046_v55 = vmul.f32 %v2685_v10, %v344_v19  ;;  %v1126_v46 = vmul.f32 %v1088_v42, %v344_v19 }
 0x27a   : > { %1355 = vrot.lane.b32.xlu2 %v1124_v44, %s2027_s22  ;;  %v966_v44 = vmul.f32 %v2710_v56, %v344_v19  ;;  %v349_v47 = vpop.f32.mrf.mxu0 }
 0x27b   : > { %v2755_v60 = vpop.permute.xlu1 %1157  ;;  %v1094_v0 = vpop.permute.xlu0 %1093  ;;  %v1128_v19 = vmul.f32 %v2714_v22, %v349_v47 }
 0x27c   : > { %v2757_v32 = vpop.permute.xlu2 %1097 }
 0x281   : > { %1357 = vrot.lane.b32.xlu0 %v1125_v50, %s2027_s22  ;;  %1229 = vrot.lane.b32.xlu1 %v965_v53, %s2027_s22  ;;  %v967_v50 = vmul.f32 %v2694_v41, %v347_v37  ;;  %v1047_v53 = vmul.f32 %v1010_v35, %v347_v37 }
 0x282   : > { %1293 = vrot.lane.b32.xlu2 %v1045_v58, %s2027_s22  ;;  %v1127_v58 = vmul.f32 %v1090_v51, %v347_v37 }
 0x283   : > { %v1096_v45 = vpop.permute.xlu1 %1095  ;;  %v1016_v63 = vpop.permute.xlu0 %1015 }
 0x284   : > { %v1406_v29 = vpop.permute.xlu2 %1405 }
 0x289   : > { %1295 = vrot.lane.b32.xlu0 %v1046_v55, %s2027_s22  ;;  %1359 = vrot.lane.b32.xlu1 %v1126_v46, %s2027_s22  ;;  %v968_v55 = vmul.f32 %v932_v54, %v349_v47  ;;  %v352_v46 = vpop.f32.mrf.mxu0 }
 0x28a   : > { %1231 = vrot.lane.b32.xlu2 %v966_v44, %s2027_s22  ;;  %v1048_v44 = vmul.f32 %v1012_v7, %v349_v47  ;;  %v1049_v37 = vmul.f32 %v2723_v26, %v352_v46  ;;  %v1129_v47 = vmul.f32 %v1094_v0, %v352_v46 }
 0x28b   : > { %v1018_v40 = vpop.permute.xlu1 %1017  ;;  %v938_v31 = vpop.permute.xlu0 %937 }
 0x28c   : > { %v2769_v25 = vpop.permute.xlu2 %1019 }
 0x291   : > { %1233 = vrot.lane.b32.xlu0 %v967_v50, %s2027_s22  ;;  %1297 = vrot.lane.b32.xlu1 %v1047_v53, %s2027_s22  ;;  %v969_v50 = vmul.f32 %v934_v15, %v352_v46  ;;  %v354_v53 = vpop.f32.mrf.mxu0 }
 0x292   : > { %1361 = vrot.lane.b32.xlu2 %v1127_v58, %s2027_s22 }
 0x293   : > { %v940_v10 = vpop.permute.xlu1 %939  ;;  %v2775_v56 = vpop.permute.xlu0 %1161 }
 0x294   : > { %v1344_v42 = vpop.permute.xlu2 %1343 }
 0x299   : > { %1363 = vrot.lane.b32.xlu0 %v1128_v19, %s2027_s22  ;;  %1235 = vrot.lane.b32.xlu1 %v968_v55, %s2027_s22  ;;  %v970_v55 = vmul.f32 %v2731_v62, %v354_v53  ;;  %v357_v46 = vpop.f32.mrf.mxu0 }
 0x29a   : > { %1299 = vrot.lane.b32.xlu2 %v1048_v44, %s2027_s22  ;;  %v1050_v44 = vmul.f32 %v1016_v63, %v354_v53 }
 0x29b   : > { %v1342_v41 = vpop.permute.xlu1 %1341  ;;  %v1278_v51 = vpop.permute.xlu0 %1277 }
 0x29c   : > { %v1282_v22 = vpop.permute.xlu2 %1281  ;;  %v1453_v35 = vsel %vm288_vm2, %v1214_v52, %v1278_v51  ;;  %v971_v51 = vmul.f32 %v938_v31, %v357_v46  ;;  %v1131_v31 = vmul.f32 %v2757_v32, %v357_v46 }
 0x29d   : > { %v1470_v7 = vsel %vm1469_vm5, %v1453_v35, %v1342_v41  ;;  %v1188_v41 = vmul.f32 %v2661_v57, %v2511_v17  ;;  %v1051_v35 = vmul.f32 %v1018_v40, %v357_v46  ;;  %v1189_v40 = vmul.f32 %v2712_v48, %v2529_v18 }
 0x29e   : > { %v1487_v54 = vsel %vm1486_vm6, %v1470_v7, %v1406_v29  ;;  %v1130_v29 = vmul.f32 %v1096_v45, %v354_v53 }
 0x29f   : > { %1503 = vst [vmem:[%s2785_s26] sm:$0xff] %v1487_v54 }
 0x2a1   : > { %1301 = vrot.lane.b32.xlu0 %v1049_v37, %s2027_s22  ;;  %1365 = vrot.lane.b32.xlu1 %v1129_v47, %s2027_s22  ;;  %v359_v57 = vpop.f32.mrf.mxu0 }
 0x2a2   : > { %1237 = vrot.lane.b32.xlu2 %v969_v50, %s2027_s22  ;;  %v972_v47 = vmul.f32 %v940_v10, %v359_v57  ;;  %v1052_v48 = vmul.f32 %v2769_v25, %v359_v57  ;;  %v1190_v10 = vmul.f32 %v2721_v38, %v2543_v4  ;;  %v1191_v25 = vmul.f32 %v2703_v30, %v2557_v24 }
 0x2a3   : > { %v2795_v58 = vpop.permute.xlu1 %1163  ;;  %v1216_v19 = vpop.permute.xlu0 %1215  ;;  %v1192_v38 = vmul.f32 %v2748_v3, %v2579_v36  ;;  %v1194_v30 = vmul.f32 %v2740_v1, %v2607_v49  ;;  %v1195_v3 = vmul.f32 %v2775_v56, %v2629_v59 }
 0x2a4   : > { %v1220_v52 = vpop.permute.xlu2 %1219 }
 0x2a9   : > { %1239 = vrot.lane.b32.xlu0 %v970_v55, %s2027_s22  ;;  %1303 = vrot.lane.b32.xlu1 %v1050_v44, %s2027_s22 }
 0x2aa   : > { %1367 = vrot.lane.b32.xlu2 %v1130_v29, %s2027_s22 }
 0x2ab   : > { %v1280_v26 = vpop.permute.xlu1 %1279  ;;  %v1100_v15 = vpop.permute.xlu0 %1099 }
 0x2ac   : > { %v1412_v0 = vpop.permute.xlu2 %1411  ;;  %v1454_v62 = vsel %vm288_vm2, %v1216_v19, %v1280_v26  ;;  %v1132_v32 = vmul.f32 %v1100_v15, %v359_v57  ;;  %v1193_v15 = vmul.f32 %v2755_v60, %v2593_v43 }
 0x2ad   : > { %v1471_v63 = vsel %vm1469_vm5, %v1454_v62, %v1344_v42  ;;  %v1196_v62 = vmul.f32 %v2795_v58, %v2640_v21 }
 0x2b1   : > { %1419 = vrot.lane.b32.xlu0 %v1188_v41, %s2025_s20  ;;  %1241 = vrot.lane.b32.xlu1 %v971_v51, %s2027_s22 }
 0x2b2   : > { %1305 = vrot.lane.b32.xlu2 %v1051_v35, %s2027_s22 }
 0x2b3   : > { %v1218_v45 = vpop.permute.xlu1 %1217  ;;  %v1408_v7 = vpop.permute.xlu0 %1407 }
 0x2b4   : > { %v1350_v54 = vpop.permute.xlu2 %1349  ;;  %v1488_v37 = vsel %vm1486_vm6, %v1471_v63, %v1408_v7  ;;  %v1455_v42 = vsel %vm288_vm2, %v1218_v45, %v1282_v22 }
 0x2b5   : > { %1504 = vst [vmem:[%s2785_s26 + $0x10] sm:$0xff] %v1488_v37 }
 0x2b9   : > { %1369 = vrot.lane.b32.xlu0 %v1131_v31, %s2027_s22  ;;  %1421 = vrot.lane.b32.xlu1 %v1189_v40, %s2025_s20 }
 0x2ba   : > { %1243 = vrot.lane.b32.xlu2 %v972_v47, %s2027_s22 }
 0x2bb   : > { %v1410_v50 = vpop.permute.xlu1 %1409  ;;  %v1346_v53 = vpop.permute.xlu0 %1345 }
 0x2bc   : > { %v1288_v19 = vpop.permute.xlu2 %1287  ;;  %v1472_v55 = vsel %vm1469_vm5, %v1455_v42, %v1346_v53 }
 0x2bd   : > { %v1489_v44 = vsel %vm1486_vm6, %v1472_v55, %v1410_v50 }
 0x2be   : > { %1505 = vst [vmem:[%s2785_s26 + $0x20] sm:$0xff] %v1489_v44 }
 0x2c1   : > { %1307 = vrot.lane.b32.xlu0 %v1052_v48, %s2027_s22  ;;  %1371 = vrot.lane.b32.xlu1 %v1132_v32, %s2027_s22 }
 0x2c2   : > { %1423 = vrot.lane.b32.xlu2 %v1190_v10, %s2025_s20 }
 0x2c3   : > { %v1348_v22 = vpop.permute.xlu1 %1347  ;;  %v1284_v29 = vpop.permute.xlu0 %1283 }
 0x2c4   : > { %v1226_v26 = vpop.permute.xlu2 %1225  ;;  %v1456_v46 = vsel %vm288_vm2, %v1220_v52, %v1284_v29 }
 0x2c5   : > { %v1473_v41 = vsel %vm1469_vm5, %v1456_v46, %v1348_v22  ;;  %v3143_v46 = vld [vmem:[#allocation18_spill] sm:$0xff] }
 0x2c6   : > { %v1490_v51 = vsel %vm1486_vm6, %v1473_v41, %v1412_v0  ;;  %v3144_v41 = vld [vmem:[#allocation20_spill] sm:$0xff] }
 0x2c7   : > { %1506 = vst [vmem:[%s2785_s26 + $0x30] sm:$0xff] %v1490_v51 }
 0x2c9   : > { %1425 = vrot.lane.b32.xlu0 %v1191_v25, %s2025_s20  ;;  %1427 = vrot.lane.b32.xlu1 %v1192_v38, %s2025_s20 }
 0x2ca   : > { %1429 = vrot.lane.b32.xlu2 %v1193_v15, %s2025_s20  ;;  %v3145_v15 = vld [vmem:[#allocation22_spill] sm:$0xff] }
 0x2cb   : > { %v1286_v52 = vpop.permute.xlu1 %1285  ;;  %v1222_v35 = vpop.permute.xlu0 %1221 }
 0x2cc   : > { %v1418_v0 = vpop.permute.xlu2 %1417  ;;  %v1457_v60 = vsel %vm288_vm2, %v1222_v35, %v1286_v52 }
 0x2cd   : > { %v1474_v63 = vsel %vm1469_vm5, %v1457_v60, %v1350_v54 }
 0x2d1   : > { %1431 = vrot.lane.b32.xlu0 %v1194_v30, %s2025_s20  ;;  %1433 = vrot.lane.b32.xlu1 %v1195_v3, %s2025_s20 }
 0x2d2   : > { %1435 = vrot.lane.b32.xlu2 %v1196_v62, %s2025_s20 }
 0x2d3   : > { %v1224_v45 = vpop.permute.xlu1 %1223  ;;  %v1414_v7 = vpop.permute.xlu0 %1413 }
 0x2d4   : > { %v2850_v1 = vpop.permute.xlu2 %1355  ;;  %v1491_v56 = vsel %vm1486_vm6, %v1474_v63, %v1414_v7  ;;  %v1458_v58 = vsel %vm288_vm2, %v1224_v45, %v1288_v19 }
 0x2d5   : > { %1507 = vst [vmem:[%s2785_s26 + $0x40] sm:$0xff] %v1491_v56 }
 0x2d9   : > { %1519 = vrot.lane.b32.xlu0 %v2435_v2, %s2026_s21  ;;  %1521 = vrot.lane.b32.xlu1 %v2439_v28, %s2026_s21 }
 0x2da   : > { %1523 = vrot.lane.b32.xlu2 %v2449_v5, %s2026_s21 }
 0x2db   : > { %v1416_v37 = vpop.permute.xlu1 %1415  ;;  %v1352_v54 = vpop.permute.xlu0 %1351 }
 0x2dc   : > { %v2861_v57 = vpop.permute.xlu2 %1293  ;;  %v1475_v40 = vsel %vm1469_vm5, %v1458_v58, %v1352_v54 }
 0x2dd   : > { %v1492_v31 = vsel %vm1486_vm6, %v1475_v40, %v1416_v37 }
 0x2de   : > { %1508 = vst [vmem:[%s2785_s26 + $0x50] sm:$0xff] %v1492_v31 }
 0x2e1   : > { %1525 = vrot.lane.b32.xlu0 %v2467_v8, %s2026_s21  ;;  %1527 = vrot.lane.b32.xlu1 %v2479_v11, %s2026_s21 }
 0x2e2   : > { %1529 = vrot.lane.b32.xlu2 %v2491_v13, %s2026_s21 }
 0x2e3   : > { %v1354_v47 = vpop.permute.xlu1 %1353  ;;  %v1290_v42 = vpop.permute.xlu0 %1289 }
 0x2e4   : > { %v1232_v50 = vpop.permute.xlu2 %1231  ;;  %v1459_v53 = vsel %vm288_vm2, %v1226_v26, %v1290_v42  ;;  %v3142_v26 = vld [vmem:[#allocation16_spill] sm:$0xff] }
 0x2e5   : > { %v1476_v19 = vsel %vm1469_vm5, %v1459_v53, %v1354_v47 }
 0x2e6   : > { %v1493_v55 = vsel %vm1486_vm6, %v1476_v19, %v1418_v0 }
 0x2e7   : > { %1509 = vst [vmem:[%s2785_s26 + $0x60] sm:$0xff] %v1493_v55 }
 0x2e9   : > { %1531 = vrot.lane.b32.xlu0 %v2509_v16, %s2026_s21  ;;  %1533 = vrot.lane.b32.xlu1 %v2521_v20, %s2026_s21 }
 0x2ea   : > { %1535 = vrot.lane.b32.xlu2 %v2535_v23, %s2026_s21 }
 0x2eb   : > { %v1292_v44 = vpop.permute.xlu1 %1291  ;;  %v1228_v48 = vpop.permute.xlu0 %1227 }
 0x2ec   : > { %v2882_v32 = vpop.permute.xlu2 %1361  ;;  %v1460_v45 = vsel %vm288_vm2, %v1228_v48, %v1292_v44 }
 0x2f1   : > { %1537 = vrot.lane.b32.xlu0 %v2555_v27, %s2026_s21  ;;  %1539 = vrot.lane.b32.xlu1 %v2569_v34, %s2026_s21 }
 0x2f2   : > { %1541 = vrot.lane.b32.xlu2 %v2583_v39, %s2026_s21 }
 0x2f3   : > { %v1230_v10 = vpop.permute.xlu1 %1229  ;;  %v1358_v22 = vpop.permute.xlu0 %1357 }
 0x2f4   : > { %v2890_v29 = vpop.permute.xlu2 %1299 }
 0x2f9   : > { %1543 = vrot.lane.b32.xlu0 %v3142_v26, %s2026_s21  ;;  %1545 = vrot.lane.b32.xlu1 %v3143_v46, %s2026_s21 }
 0x2fa   : > { %1547 = vrot.lane.b32.xlu2 %v3144_v41, %s2026_s21 }
 0x2fb   : > { %v1360_v51 = vpop.permute.xlu1 %1359  ;;  %v1296_v25 = vpop.permute.xlu0 %1295 }
 0x2fc   : > { %v1238_v38 = vpop.permute.xlu2 %1237 }
 0x301   : > { %1549 = vrot.lane.b32.xlu0 %v3145_v15, %s2026_s21  ;;  %1583 = vrot.lane.b32.xlu1 %v2435_v2, %s2025_s20 }
 0x302   : > { %1585 = vrot.lane.b32.xlu2 %v2439_v28, %s2025_s20 }
 0x303   : > { %v1298_v52 = vpop.permute.xlu1 %1297  ;;  %v1234_v35 = vpop.permute.xlu0 %1233 }
 0x304   : > { %v2904_v0 = vpop.permute.xlu2 %1367  ;;  %v1463_v48 = vsel %vm288_vm2, %v1234_v35, %v1298_v52 }
 0x309   : > { %1587 = vrot.lane.b32.xlu0 %v2449_v5, %s2025_s20  ;;  %1589 = vrot.lane.b32.xlu1 %v2467_v8, %s2025_s20  ;;  %v1462_v8 = vsel %vm288_vm2, %v1232_v50, %v1296_v25 }
 0x30a   : > { %1591 = vrot.lane.b32.xlu2 %v2479_v11, %s2025_s20 }
 0x30b   : > { %v1236_v30 = vpop.permute.xlu1 %1235  ;;  %v1364_v3 = vpop.permute.xlu0 %1363 }
 0x30c   : > { %v2912_v62 = vpop.permute.xlu2 %1305 }
 0x311   : > { %1593 = vrot.lane.b32.xlu0 %v2491_v13, %s2025_s20  ;;  %1595 = vrot.lane.b32.xlu1 %v2509_v16, %s2025_s20 }
 0x312   : > { %1597 = vrot.lane.b32.xlu2 %v2521_v20, %s2025_s20  ;;  %v1479_v20 = vsel %vm1469_vm5, %v1462_v8, %v1360_v51 }
 0x313   : > { %v1366_v2 = vpop.permute.xlu1 %1365  ;;  %v1302_v28 = vpop.permute.xlu0 %1301 }
 0x314   : > { %v1244_v5 = vpop.permute.xlu2 %1243 }
 0x319   : > { %1599 = vrot.lane.b32.xlu0 %v2535_v23, %s2025_s20  ;;  %1601 = vrot.lane.b32.xlu1 %v2555_v27, %s2025_s20  ;;  %v1465_v23 = vsel %vm288_vm2, %v1238_v38, %v1302_v28 }
 0x31a   : > { %1603 = vrot.lane.b32.xlu2 %v2569_v34, %s2025_s20  ;;  %v1477_v34 = vsel %vm1469_vm5, %v1460_v45, %v2850_v1  ;;  %v1482_v56 = vsel %vm1469_vm5, %v1465_v23, %v1366_v2 }
 0x31b   : > { %v1304_v11 = vpop.permute.xlu1 %1303  ;;  %v1240_v13 = vpop.permute.xlu0 %1239 }
 0x31c   : > { %v1424_v16 = vpop.permute.xlu2 %1423 }
 0x31d   : > { %v1496_v60 = vsel %vm1486_vm6, %v1479_v20, %v1424_v16 }
 0x31e   : > { %1512 = vst [vmem:[%s2785_s26 + $0x90] sm:$0xff] %v1496_v60 }
 0x321   : > { %1605 = vrot.lane.b32.xlu0 %v2583_v39, %s2025_s20  ;;  %1607 = vrot.lane.b32.xlu1 %v3142_v26, %s2025_s20  ;;  %v1461_v39 = vsel %vm288_vm2, %v1230_v10, %v2861_v57  ;;  %v1464_v10 = vsel %vm288_vm2, %v1236_v30, %v2890_v29  ;;  %v1466_v29 = vsel %vm288_vm2, %v1240_v13, %v1304_v11  ;;  %v3146_v13 = vld [vmem:[#allocation2_spill] sm:$0xff] }
 0x322   : > { %1609 = vrot.lane.b32.xlu2 %v3143_v46, %s2025_s20  ;;  %v1478_v1 = vsel %vm1469_vm5, %v1461_v39, %v1358_v22  ;;  %v1481_v22 = vsel %vm1469_vm5, %v1464_v10, %v1364_v3  ;;  %v1480_v46 = vsel %vm1469_vm5, %v1463_v48, %v2882_v32  ;;  %v1483_v35 = vsel %vm1469_vm5, %v1466_v29, %v2904_v0 }
 0x323   : > { %v1242_v27 = vpop.permute.xlu1 %1241  ;;  %v1420_v63 = vpop.permute.xlu0 %1419 }
 0x324   : > { %v1430_v7 = vpop.permute.xlu2 %1429  ;;  %v1494_v58 = vsel %vm1486_vm6, %v1477_v34, %v1420_v63 }
 0x325   : > { %v1499_v37 = vsel %vm1486_vm6, %v1482_v56, %v1430_v7  ;;  %1510 = vst [vmem:[%s2785_s26 + $0x70] sm:$0xff] %v1494_v58  ;;  %v3147_v56 = vld [vmem:[#allocation4_spill] sm:$0xff] }
 0x326   : > { %1515 = vst [vmem:[%s2785_s26 + $0xc0] sm:$0xff] %v1499_v37 }
 0x329   : > { %1611 = vrot.lane.b32.xlu0 %v3144_v41, %s2025_s20  ;;  %1613 = vrot.lane.b32.xlu1 %v3145_v15, %s2025_s20  ;;  %v1467_v15 = vsel %vm288_vm2, %v1242_v27, %v2912_v62 }
 0x32b   : > { %v1422_v54 = vpop.permute.xlu1 %1421  ;;  %v1370_v40 = vpop.permute.xlu0 %1369 }
 0x32c   : > { %v1436_v31 = vpop.permute.xlu2 %1435  ;;  %v1495_v47 = vsel %vm1486_vm6, %v1478_v1, %v1422_v54  ;;  %v1484_v32 = vsel %vm1469_vm5, %v1467_v15, %v1370_v40  ;;  %v3148_v1 = vld [vmem:[#allocation7_spill] sm:$0xff]  ;;  %v3156_v15 = vld [vmem:[#allocation8_spill] sm:$0xff] }
 0x32d   : > { %1511 = vst [vmem:[%s2785_s26 + $0x80] sm:$0xff] %v1495_v47 }
 0x333   : > { %v1372_v42 = vpop.permute.xlu1 %1371  ;;  %v1308_v50 = vpop.permute.xlu0 %1307 }
 0x334   : > { %v1524_v53 = vpop.permute.xlu2 %1523  ;;  %v1468_v57 = vsel %vm288_vm2, %v1244_v5, %v1308_v50 }
 0x335   : > { %v1569_v19 = vmul.f32 %v1524_v53, %v2445_v33  ;;  %v1485_v55 = vsel %vm1469_vm5, %v1468_v57, %v1372_v42  ;;  %v3149_v42 = vld [vmem:[#allocation10_spill] sm:$0xff]  ;;  %v3150_v57 = vld [vmem:[#allocation3_spill] sm:$0xff] }
 0x336   : > { %v1502_v44 = vsel %vm1486_vm6, %v1485_v55, %v1436_v31 }
 0x337   : > { %1518 = vst [vmem:[%s2785_s26 + $0xf0] sm:$0xff] %v1502_v44  ;;  %1667 = vrot.lane.b32.xlu1 %v1569_v19, %s2025_s20  ;;  %v3151_v44 = vld [vmem:[#allocation13_spill] sm:$0xff] }
 0x33b   : > { %v1428_v26 = vpop.permute.xlu1 %1427  ;;  %v1426_v33 = vpop.permute.xlu0 %1425 }
 0x33c   : > { %v1530_v41 = vpop.permute.xlu2 %1529  ;;  %v1498_v51 = vsel %vm1486_vm6, %v1481_v22, %v1428_v26  ;;  %v1497_v25 = vsel %vm1486_vm6, %v1480_v46, %v1426_v33  ;;  %v3152_v22 = vld [vmem:[#allocation6_spill] sm:$0xff]  ;;  %v3153_v46 = vld [vmem:[#allocation5_spill] sm:$0xff] }
 0x33d   : > { %v1572_v38 = vmul.f32 %v1530_v41, %v2487_v12  ;;  %1514 = vst [vmem:[%s2785_s26 + $0xb0] sm:$0xff] %v1498_v51  ;;  %v3154_v41 = vld [vmem:[#allocation17_spill] sm:$0xff] }
 0x33e   : > { %1513 = vst [vmem:[%s2785_s26 + $0xa0] sm:$0xff] %v1497_v25 }
 0x33f   : > { %1673 = vrot.lane.b32.xlu1 %v1572_v38, %s2025_s20  ;;  %v3155_v38 = vld [vmem:[#allocation9_spill] sm:$0xff] }
 0x343   : > { %v1434_v52 = vpop.permute.xlu1 %1433  ;;  %v1432_v30 = vpop.permute.xlu0 %1431 }
 0x344   : > { %v1536_v3 = vpop.permute.xlu2 %1535  ;;  %v1501_v2 = vsel %vm1486_vm6, %v1484_v32, %v1434_v52  ;;  %v1500_v12 = vsel %vm1486_vm6, %v1483_v35, %v1432_v30  ;;  %v3157_v30 = vld [vmem:[#allocation12_spill] sm:$0xff] }
 0x345   : > { %v1575_v28 = vmul.f32 %v1536_v3, %v2529_v18  ;;  %1517 = vst [vmem:[%s2785_s26 + $0xe0] sm:$0xff] %v1501_v2  ;;  %v3158_v2 = vld [vmem:[#allocation11_spill] sm:$0xff] }
 0x346   : > { %1516 = vst [vmem:[%s2785_s26 + $0xd0] sm:$0xff] %v1500_v12 }
 0x347   : > { %1679 = vrot.lane.b32.xlu1 %v1575_v28, %s2025_s20 }
 0x34b   : > { %v1522_v5 = vpop.permute.xlu1 %1521  ;;  %v1520_v62 = vpop.permute.xlu0 %1519 }
 0x34c   : > { %v1542_v8 = vpop.permute.xlu2 %1541  ;;  %v1568_v11 = vmul.f32 %v1522_v5, %v2424_v61  ;;  %v1567_v16 = vmul.f32 %v1520_v62, %v3146_v13  ;;  %v3159_v62 = vld [vmem:[#allocation15_spill] sm:$0xff] }
 0x34d   : > { %v1578_v0 = vmul.f32 %v1542_v8, %v2579_v36 }
 0x34e   : > { %1665 = vrot.lane.b32.xlu0 %v1568_v11, %s2025_s20  ;;  %1663 = vrot.lane.b32.xlu2 %v1567_v16, %s2025_s20  ;;  %v3160_v11 = vld [vmem:[#allocation14_spill] sm:$0xff] }
 0x34f   : > { %1685 = vrot.lane.b32.xlu1 %v1578_v0, %s2025_s20 }
 0x353   : > { %v1528_v18 = vpop.permute.xlu1 %1527  ;;  %v1526_v20 = vpop.permute.xlu0 %1525 }
 0x354   : > { %v1548_v60 = vpop.permute.xlu2 %1547  ;;  %v1571_v45 = vmul.f32 %v1528_v18, %v2469_v9  ;;  %v1570_v23 = vmul.f32 %v1526_v20, %v2457_v6  ;;  %v3161_v18 = vld [vmem:[#allocation21_spill] sm:$0xff] }
 0x355   : > { %v1581_v27 = vmul.f32 %v1548_v60, %v2629_v59  ;;  %v3162_v60 = vld [vmem:[#allocation19_spill] sm:$0xff] }
 0x356   : > { %1671 = vrot.lane.b32.xlu0 %v1571_v45, %s2025_s20  ;;  %1669 = vrot.lane.b32.xlu2 %v1570_v23, %s2025_s20 }
 0x357   : > { %1691 = vrot.lane.b32.xlu1 %v1581_v27, %s2025_s20 }
 0x35b   : > { %v1534_v61 = vpop.permute.xlu1 %1533  ;;  %v1532_v36 = vpop.permute.xlu0 %1531 }
 0x35c   : > { %v1586_v34 = vpop.permute.xlu2 %1585  ;;  %v1574_v63 = vmul.f32 %v1534_v61, %v2511_v17  ;;  %v1573_v7 = vmul.f32 %v1532_v36, %v2499_v14 }
 0x35d   : > { %v1632_v58 = vmul.f32 %v1586_v34, %v3147_v56 }
 0x35e   : > { %1677 = vrot.lane.b32.xlu0 %v1574_v63, %s2025_s20  ;;  %1675 = vrot.lane.b32.xlu2 %v1573_v7, %s2025_s20 }
 0x35f   : > { %1729 = vrot.lane.b32.xlu1 %v1632_v58, %s2026_s21 }
 0x363   : > { %v1540_v6 = vpop.permute.xlu1 %1539  ;;  %v1538_v9 = vpop.permute.xlu0 %1537 }
 0x364   : > { %v1592_v59 = vpop.permute.xlu2 %1591  ;;  %v1577_v37 = vmul.f32 %v1540_v6, %v2557_v24  ;;  %v1576_v39 = vmul.f32 %v1538_v9, %v2543_v4 }
 0x365   : > { %v1635_v54 = vmul.f32 %v1592_v59, %v3148_v1 }
 0x366   : > { %1683 = vrot.lane.b32.xlu0 %v1577_v37, %s2025_s20  ;;  %1681 = vrot.lane.b32.xlu2 %v1576_v39, %s2025_s20 }
 0x367   : > { %1735 = vrot.lane.b32.xlu1 %v1635_v54, %s2026_s21 }
 0x36b   : > { %v1546_v14 = vpop.permute.xlu1 %1545  ;;  %v1544_v17 = vpop.permute.xlu0 %1543 }
 0x36c   : > { %v1598_v40 = vpop.permute.xlu2 %1597  ;;  %v1580_v31 = vmul.f32 %v1546_v14, %v2607_v49  ;;  %v1579_v47 = vmul.f32 %v1544_v17, %v2593_v43 }
 0x36d   : > { %v1638_v50 = vmul.f32 %v1598_v40, %v3149_v42 }
 0x36e   : > { %1689 = vrot.lane.b32.xlu0 %v1580_v31, %s2025_s20  ;;  %1687 = vrot.lane.b32.xlu2 %v1579_v47, %s2025_s20 }
 0x36f   : > { %1741 = vrot.lane.b32.xlu1 %v1638_v50, %s2026_s21 }
 0x373   : > { %v1584_v4 = vpop.permute.xlu1 %1583  ;;  %v1550_v24 = vpop.permute.xlu0 %1549 }
 0x374   : > { %v1604_v53 = vpop.permute.xlu2 %1603  ;;  %v1631_v19 = vmul.f32 %v1584_v4, %v3150_v57  ;;  %v1582_v55 = vmul.f32 %v1550_v24, %v2640_v21 }
 0x375   : > { %v1641_v48 = vmul.f32 %v1604_v53, %v3151_v44 }
 0x376   : > { %1727 = vrot.lane.b32.xlu0 %v1631_v19, %s2026_s21  ;;  %1693 = vrot.lane.b32.xlu2 %v1582_v55, %s2025_s20 }
 0x377   : > { %1747 = vrot.lane.b32.xlu1 %v1641_v48, %s2026_s21 }
 0x37b   : > { %v1590_v43 = vpop.permute.xlu1 %1589  ;;  %v1588_v49 = vpop.permute.xlu0 %1587 }
 0x37c   : > { %v1610_v10 = vpop.permute.xlu2 %1609  ;;  %v1634_v26 = vmul.f32 %v1590_v43, %v3152_v22  ;;  %v1633_v33 = vmul.f32 %v1588_v49, %v3153_v46 }
 0x37d   : > { %v1644_v51 = vmul.f32 %v1610_v10, %v3154_v41 }
 0x37e   : > { %1733 = vrot.lane.b32.xlu0 %v1634_v26, %s2026_s21  ;;  %1731 = vrot.lane.b32.xlu2 %v1633_v33, %s2026_s21 }
 0x37f   : > { %1753 = vrot.lane.b32.xlu1 %v1644_v51, %s2026_s21 }
 0x383   : > { %v1596_v21 = vpop.permute.xlu1 %1595  ;;  %v1594_v25 = vpop.permute.xlu0 %1593 }
 0x384   : > { %v1637_v29 = vmul.f32 %v1596_v21, %v3155_v38  ;;  %v1636_v32 = vmul.f32 %v1594_v25, %v3156_v15 }
 0x386   : > { %1739 = vrot.lane.b32.xlu0 %v1637_v29, %s2026_s21  ;;  %1737 = vrot.lane.b32.xlu2 %v1636_v32, %s2026_s21 }
 0x38b   : > { %v1602_v52 = vpop.permute.xlu1 %1601  ;;  %v1600_v35 = vpop.permute.xlu0 %1599 }
 0x38c   : > { %v1640_v3 = vmul.f32 %v1602_v52, %v3157_v30  ;;  %v1639_v12 = vmul.f32 %v1600_v35, %v3158_v2 }
 0x38e   : > { %1745 = vrot.lane.b32.xlu0 %v1640_v3, %s2026_s21  ;;  %1743 = vrot.lane.b32.xlu2 %v1639_v12, %s2026_s21 }
 0x393   : > { %v1608_v28 = vpop.permute.xlu1 %1607  ;;  %v1606_v5 = vpop.permute.xlu0 %1605 }
 0x394   : > { %v1643_v8 = vmul.f32 %v1608_v28, %v3159_v62  ;;  %v1642_v13 = vmul.f32 %v1606_v5, %v3160_v11 }
 0x396   : > { %1751 = vrot.lane.b32.xlu0 %v1643_v8, %s2026_s21  ;;  %1749 = vrot.lane.b32.xlu2 %v1642_v13, %s2026_s21 }
 0x39b   : > { %v1614_v16 = vpop.permute.xlu1 %1613  ;;  %v1612_v0 = vpop.permute.xlu0 %1611 }
 0x39c   : > { %v1646_v20 = vmul.f32 %v1614_v16, %v3161_v18  ;;  %v1645_v45 = vmul.f32 %v1612_v0, %v3162_v60 }
 0x39e   : > { %1757 = vrot.lane.b32.xlu0 %v1646_v20, %s2026_s21  ;;  %1755 = vrot.lane.b32.xlu2 %v1645_v45, %s2026_s21 }
 0x3a8   : > { %v1664_v23 = vpop.permute.xlu2 %1663 }
 0x3a9   : > { %v1668_v27 = vpop.permute.xlu1 %1667 }
 0x3b0   : > { %v1670_v61 = vpop.permute.xlu2 %1669 }
 0x3b1   : > { %v1674_v36 = vpop.permute.xlu1 %1673 }
 0x3b8   : > { %v1676_v34 = vpop.permute.xlu2 %1675 }
 0x3b9   : > { %v1680_v63 = vpop.permute.xlu1 %1679 }
 0x3c0   : > { %v1682_v7 = vpop.permute.xlu2 %1681  ;;  %v1666_v56 = vpop.permute.xlu0 %1665 }
 0x3c1   : > { %v1686_v58 = vpop.permute.xlu1 %1685 }
 0x3c8   : > { %v1688_v6 = vpop.permute.xlu2 %1687  ;;  %v1672_v9 = vpop.permute.xlu0 %1671 }
 0x3c9   : > { %v1692_v59 = vpop.permute.xlu1 %1691 }
 0x3d0   : > { %v1694_v37 = vpop.permute.xlu2 %1693  ;;  %v1678_v39 = vpop.permute.xlu0 %1677 }
 0x3d1   : > { %v1730_v1 = vpop.permute.xlu1 %1729 }
 0x3d2   : > { %v1776_v54 = vsel %vm288_vm2, %v1666_v56, %v1730_v1 }
 0x3d3   : > { %1792 = vst.msk [vmem:[%s2785_s26 + $0x18] sm:$0xff] %vm1469_vm5, %v1776_v54 }
 0x3d8   : > { %v1732_v14 = vpop.permute.xlu2 %1731  ;;  %v1684_v17 = vpop.permute.xlu0 %1683 }
 0x3d9   : > { %v1736_v40 = vpop.permute.xlu1 %1735  ;;  %v1777_v31 = vsel %vm288_vm2, %v1668_v27, %v1732_v14 }
 0x3da   : > { %v1779_v47 = vsel %vm288_vm2, %v1672_v9, %v1736_v40  ;;  %1793 = vst.msk [vmem:[%s2785_s26 + $0x28] sm:$0xff] %vm1469_vm5, %v1777_v31 }
 0x3db   : > { %1795 = vst.msk [vmem:[%s2785_s26 + $0x48] sm:$0xff] %vm1469_vm5, %v1779_v47 }
 0x3e0   : > { %v1738_v42 = vpop.permute.xlu2 %1737  ;;  %v1690_v50 = vpop.permute.xlu0 %1689 }
 0x3e1   : > { %v1742_v4 = vpop.permute.xlu1 %1741  ;;  %v1780_v24 = vsel %vm288_vm2, %v1674_v36, %v1738_v42 }
 0x3e2   : > { %v1782_v53 = vsel %vm288_vm2, %v1678_v39, %v1742_v4  ;;  %1796 = vst.msk [vmem:[%s2785_s26 + $0x58] sm:$0xff] %vm1469_vm5, %v1780_v24 }
 0x3e3   : > { %1798 = vst.msk [vmem:[%s2785_s26 + $0x78] sm:$0xff] %vm1469_vm5, %v1782_v53 }
 0x3e8   : > { %v1744_v57 = vpop.permute.xlu2 %1743  ;;  %v1728_v19 = vpop.permute.xlu0 %1727 }
 0x3e9   : > { %v1748_v55 = vpop.permute.xlu1 %1747  ;;  %v1783_v44 = vsel %vm288_vm2, %v1680_v63, %v1744_v57  ;;  %v1775_v48 = vsel %vm288_vm2, %v1664_v23, %v1728_v19 }
 0x3ea   : > { %v1785_v43 = vsel %vm288_vm2, %v1684_v17, %v1748_v55  ;;  %1799 = vst.msk [vmem:[%s2785_s26 + $0x88] sm:$0xff] %vm1469_vm5, %v1783_v44 }
 0x3eb   : > { %1801 = vst.msk [vmem:[%s2785_s26 + $0xa8] sm:$0xff] %vm1469_vm5, %v1785_v43 }
 0x3ec   : > { %1791 = vst.msk [vmem:[%s2785_s26 + $0x8] sm:$0xff] %vm1469_vm5, %v1775_v48 }
 0x3f0   : > { %v1750_v49 = vpop.permute.xlu2 %1749  ;;  %v1734_v10 = vpop.permute.xlu0 %1733 }
 0x3f1   : > { %v1754_v22 = vpop.permute.xlu1 %1753  ;;  %v1786_v26 = vsel %vm288_vm2, %v1686_v58, %v1750_v49  ;;  %v1778_v46 = vsel %vm288_vm2, %v1670_v61, %v1734_v10 }
 0x3f2   : > { %v1788_v33 = vsel %vm288_vm2, %v1690_v50, %v1754_v22  ;;  %1802 = vst.msk [vmem:[%s2785_s26 + $0xb8] sm:$0xff] %vm1469_vm5, %v1786_v26 }
 0x3f3   : > { %1804 = vst.msk [vmem:[%s2785_s26 + $0xd8] sm:$0xff] %vm1469_vm5, %v1788_v33 }
 0x3f4   : > { %1794 = vst.msk [vmem:[%s2785_s26 + $0x38] sm:$0xff] %vm1469_vm5, %v1778_v46 }
 0x3f8   : > { %v1756_v41 = vpop.permute.xlu2 %1755  ;;  %v1740_v51 = vpop.permute.xlu0 %1739 }
 0x3f9   : > { %v1789_v21 = vsel %vm288_vm2, %v1692_v59, %v1756_v41  ;;  %v1781_v25 = vsel %vm288_vm2, %v1676_v34, %v1740_v51 }
 0x3fa   : > { %1805 = vst.msk [vmem:[%s2785_s26 + $0xe8] sm:$0xff] %vm1469_vm5, %v1789_v21 }
 0x3fb   : > { %1797 = vst.msk [vmem:[%s2785_s26 + $0x68] sm:$0xff] %vm1469_vm5, %v1781_v25 }
 0x400   : > { %v1746_v38 = vpop.permute.xlu0 %1745 }
 0x401   : > { %v1784_v29 = vsel %vm288_vm2, %v1682_v7, %v1746_v38 }
 0x402   : > { %1800 = vst.msk [vmem:[%s2785_s26 + $0x98] sm:$0xff] %vm1469_vm5, %v1784_v29 }
 0x408   : > { %v1752_v15 = vpop.permute.xlu0 %1751 }
 0x409   : > { %v1787_v32 = vsel %vm288_vm2, %v1688_v6, %v1752_v15 }
 0x40a   : > { %1803 = vst.msk [vmem:[%s2785_s26 + $0xc8] sm:$0xff] %vm1469_vm5, %v1787_v32 }
 0x410   : > { %v1758_v52 = vpop.permute.xlu0 %1757 }
 0x411   : > { %v1790_v35 = vsel %vm288_vm2, %v1694_v37, %v1758_v52 }
 0x412   : > { %1806 = vst.msk [vmem:[%s2785_s26 + $0xf8] sm:$0xff] %vm1469_vm5, %v1790_v35 }
 0x413 PF: > { %s12_s9 = sadd.s32 1, %s2018_s9  }
 0x414   : > { %p9_p4 = scmp.ge.s32.totalorder %s12_s9, 4  }
 0x416   :  { %11 = sbr.rel (!%p9_p4) target bundleno = 1 (0x1), region = 58 }

</bundles_post_ra>
